<compile_context>
chip_gen: v5e
topology: v5e:2x2
jax: 0.10.0
libtpu: 0.0.40
codegen_flags: <defaults>
</compile_context>

<pallas_src>
import functools

import jax
import jax.numpy as jnp
from jax.experimental import pallas as pl
from jax.experimental.pallas import tpu as pltpu


NUM_LAYERS = 8
# ReLU follows every linear except the encoder bottleneck (idx 3) and the
# final decoder output (idx 7) -- matches nn.ReLU placement in the Sequentials.
RELU_AFTER = tuple(i not in (3, 7) for i in range(NUM_LAYERS))

LANE = 128      # lane width: last dims padded to 128 for dense MXU tiles / stores
SUBLANE = 8


def _round_up(x, m):
    return ((x + m - 1) // m) * m


def _layer_dims(feature_size):
    F = feature_size
    return [F, int(F * 0.75), int(F * 0.5), int(F * 0.25), int(F * 0.1),
            int(F * 0.25), int(F * 0.5), int(F * 0.75), F]


def _ae_kernel(x_ref, *refs):
    """Whole-autoencoder forward for one batch tile.

    refs = (w0, b0, w1, b1, ..., w7, b7, out_ref); weights bf16, biases f32.
    """
    out_ref = refs[-1]
    params = refs[:-1]

    h = x_ref[...].astype(jnp.bfloat16)
    for i in range(NUM_LAYERS):
        w = params[2 * i][...]          # (d_in_pad, d_out_pad) bf16
        b = params[2 * i + 1][...]      # (1, d_out_pad) f32
        a = jnp.dot(h, w, preferred_element_type=jnp.float32) + b
        if RELU_AFTER[i]:
            a = jnp.maximum(a, 0.0)
        h = a if i == NUM_LAYERS - 1 else a.astype(jnp.bfloat16)
    out_ref[...] = h.astype(out_ref.dtype)


@functools.partial(jax.jit, static_argnames=("batch_tile",))
def autoencoder_forward(x, params, *, batch_tile=256):
    """x: (B, F) float32. params: list of (w, b) with w:(d_in,d_out), b:(1,d_out)."""
    B, F = x.shape
    dims = _layer_dims(F)
    pdims = [_round_up(d, LANE) for d in dims]
    F_pad = pdims[0]

    # Clamp tile for tiny batches; pad batch to a tile multiple.
    batch_tile = min(batch_tile, _round_up(B, SUBLANE))
    batch_tile = _round_up(batch_tile, SUBLANE)
    B_pad = _round_up(B, batch_tile)

    x_pad = jnp.pad(x.astype(jnp.float32), ((0, B_pad - B), (0, F_pad - F)))

    # Zero-pad every weight/bias to lane-aligned shapes; weights -> bf16.
    flat_params = []
    for i, (w, b) in enumerate(params):
        assert w.shape == (dims[i], dims[i + 1])
        wp = jnp.pad(
            w, ((0, pdims[i] - dims[i]), (0, pdims[i + 1] - dims[i + 1]))
        ).astype(jnp.bfloat16)
        bp = jnp.pad(
            b.reshape(1, -1), ((0, 0), (0, pdims[i + 1] - dims[i + 1]))
        ).astype(jnp.float32)
        flat_params += [wp, bp]

    grid = (B_pad // batch_tile,)

    # x / out tiled over batch; every weight/bias is a full-array block with a
    # constant index_map, so it is fetched into VMEM once and reused each step.
    x_spec = pl.BlockSpec((batch_tile, F_pad), lambda i: (i, 0))
    param_specs = [pl.BlockSpec(p.shape, lambda i: (0, 0)) for p in flat_params]
    out_spec = pl.BlockSpec((batch_tile, F_pad), lambda i: (i, 0))

    # Advisory cost estimate for the XLA scheduler.
    flops = 2 * B_pad * sum(pdims[i] * pdims[i + 1] for i in range(NUM_LAYERS))
    param_bytes = sum(p.size * p.dtype.itemsize for p in flat_params)
    io_bytes = 2 * B_pad * F_pad * 4
    cost = pl.CostEstimate(
        flops=int(flops), transcendentals=0, bytes_accessed=int(io_bytes + param_bytes)
    )

    # Scoped-VMEM budget: double-buffered params + I/O tiles + activation slack,
    # with headroom, clamped to [32 MiB default, 64 MiB] so it is safe on all gens.
    tile_bytes = batch_tile * F_pad * 4
    vmem_needed = 2 * param_bytes + 4 * tile_bytes + 8 * batch_tile * max(pdims) * 4
    vmem_limit = int(min(max(2 * vmem_needed, 32 * 1024 * 1024), 64 * 1024 * 1024))

    out_pad = pl.pallas_call(
        _ae_kernel,
        out_shape=jax.ShapeDtypeStruct((B_pad, F_pad), jnp.float32),
        grid_spec=pltpu.PrefetchScalarGridSpec(
            num_scalar_prefetch=0,
            grid=grid,
            in_specs=[x_spec] + param_specs,
            out_specs=out_spec,
        ),
        compiler_params=pltpu.CompilerParams(
            dimension_semantics=("parallel",),
            vmem_limit_bytes=vmem_limit,
        ),
        cost_estimate=cost,
    )(x_pad, *flat_params)

    return out_pad[:B, :F]


def init_params(key, feature_size):
    """Deterministic init mimicking PyTorch nn.Linear default (U(-1/sqrt(in), 1/sqrt(in)))."""
    dims = _layer_dims(feature_size)
    params = []
    for i in range(NUM_LAYERS):
        d_in, d_out = dims[i], dims[i + 1]
        key, kw, kb = jax.random.split(key, 3)
        bound = 1.0 / float(d_in) ** 0.5
        w = jax.random.uniform(kw, (d_in, d_out), jnp.float32, -bound, bound)
        b = jax.random.uniform(kb, (1, d_out), jnp.float32, -bound, bound)
        params.append((w, b))
    return params


def reference_forward(x, params):
    """Plain-JAX reference using the same bf16-input / f32-accumulate matmul math."""
    h = x.astype(jnp.bfloat16)
    for i, (w, b) in enumerate(params):
        a = jnp.dot(h, w.astype(jnp.bfloat16), preferred_element_type=jnp.float32) + b
        if RELU_AFTER[i]:
            a = jnp.maximum(a, 0.0)
        h = a if i == NUM_LAYERS - 1 else a.astype(jnp.bfloat16)
    return h


if __name__ == "__main__":
    key = jax.random.PRNGKey(0)

    # Case 1: lane-aligned feature size; batch large enough that the parallel
    # batch grid axis has 2 steps (can shard across v7x's two TensorCores).
    B1, F1 = 512, 128
    key, kx1, kp1 = jax.random.split(key, 3)
    x1 = jax.random.normal(kx1, (B1, F1), jnp.float32)
    params1 = init_params(kp1, F1)
    out1 = jax.block_until_ready(autoencoder_forward(x1, params1, batch_tile=256))
    ref1 = reference_forward(x1, params1)
    assert out1.shape == (B1, F1)
    assert jnp.allclose(out1, ref1, atol=1e-3, rtol=1e-3), (
        "case1 mismatch, max abs err %.3e" % float(jnp.max(jnp.abs(out1 - ref1))))

    # Case 2: ragged batch / non-128 feature size exercises the zero-padding path
    # (hidden dims 72/48/24/9 padded to 128, batch 10 padded to the tile).
    B2, F2 = 10, 96
    key, kx2, kp2 = jax.random.split(key, 3)
    x2 = jax.random.normal(kx2, (B2, F2), jnp.float32)
    params2 = init_params(kp2, F2)
    out2 = jax.block_until_ready(autoencoder_forward(x2, params2))
    ref2 = reference_forward(x2, params2)
    assert out2.shape == (B2, F2)
    assert jnp.allclose(out2, ref2, atol=1e-3, rtol=1e-3), (
        "case2 mismatch, max abs err %.3e" % float(jnp.max(jnp.abs(out2 - ref2))))

    print("KERNEL_OK")
</pallas_src>

<mosaic_0001>
module attributes {stable_mosaic.version = 11 : i64} {
  func.func @_ae_kernel(%arg0: i32, %arg1: memref<256x128xf32, #tpu.memory_space<vmem>>, %arg2: memref<128x128xbf16, #tpu.memory_space<vmem>>, %arg3: memref<1x128xf32, #tpu.memory_space<vmem>>, %arg4: memref<128x128xbf16, #tpu.memory_space<vmem>>, %arg5: memref<1x128xf32, #tpu.memory_space<vmem>>, %arg6: memref<128x128xbf16, #tpu.memory_space<vmem>>, %arg7: memref<1x128xf32, #tpu.memory_space<vmem>>, %arg8: memref<128x128xbf16, #tpu.memory_space<vmem>>, %arg9: memref<1x128xf32, #tpu.memory_space<vmem>>, %arg10: memref<128x128xbf16, #tpu.memory_space<vmem>>, %arg11: memref<1x128xf32, #tpu.memory_space<vmem>>, %arg12: memref<128x128xbf16, #tpu.memory_space<vmem>>, %arg13: memref<1x128xf32, #tpu.memory_space<vmem>>, %arg14: memref<128x128xbf16, #tpu.memory_space<vmem>>, %arg15: memref<1x128xf32, #tpu.memory_space<vmem>>, %arg16: memref<128x128xbf16, #tpu.memory_space<vmem>>, %arg17: memref<1x128xf32, #tpu.memory_space<vmem>>, %arg18: memref<256x128xf32, #tpu.memory_space<vmem>>) attributes {dimension_semantics = [#tpu.dimension_semantics<parallel>], iteration_bounds = array<i64: 2>, scalar_prefetch = 0 : i64, scratch_operands = 0 : i64, tpu.core_type = #tpu.core_type<tc>, window_params = [{transform_indices = @transform_0, window_bounds = array<i64: 256, 128>}, {pipeline_mode = #tpu.pipeline_mode<synchronous>, transform_indices = @transform_1, window_bounds = array<i64: 128, 128>}, {pipeline_mode = #tpu.pipeline_mode<synchronous>, transform_indices = @transform_2, window_bounds = array<i64: 1, 128>}, {pipeline_mode = #tpu.pipeline_mode<synchronous>, transform_indices = @transform_3, window_bounds = array<i64: 128, 128>}, {pipeline_mode = #tpu.pipeline_mode<synchronous>, transform_indices = @transform_4, window_bounds = array<i64: 1, 128>}, {pipeline_mode = #tpu.pipeline_mode<synchronous>, transform_indices = @transform_5, window_bounds = array<i64: 128, 128>}, {pipeline_mode = #tpu.pipeline_mode<synchronous>, transform_indices = @transform_6, window_bounds = array<i64: 1, 128>}, {pipeline_mode = #tpu.pipeline_mode<synchronous>, transform_indices = @transform_7, window_bounds = array<i64: 128, 128>}, {pipeline_mode = #tpu.pipeline_mode<synchronous>, transform_indices = @transform_8, window_bounds = array<i64: 1, 128>}, {pipeline_mode = #tpu.pipeline_mode<synchronous>, transform_indices = @transform_9, window_bounds = array<i64: 128, 128>}, {pipeline_mode = #tpu.pipeline_mode<synchronous>, transform_indices = @transform_10, window_bounds = array<i64: 1, 128>}, {pipeline_mode = #tpu.pipeline_mode<synchronous>, transform_indices = @transform_11, window_bounds = array<i64: 128, 128>}, {pipeline_mode = #tpu.pipeline_mode<synchronous>, transform_indices = @transform_12, window_bounds = array<i64: 1, 128>}, {pipeline_mode = #tpu.pipeline_mode<synchronous>, transform_indices = @transform_13, window_bounds = array<i64: 128, 128>}, {pipeline_mode = #tpu.pipeline_mode<synchronous>, transform_indices = @transform_14, window_bounds = array<i64: 1, 128>}, {pipeline_mode = #tpu.pipeline_mode<synchronous>, transform_indices = @transform_15, window_bounds = array<i64: 128, 128>}, {pipeline_mode = #tpu.pipeline_mode<synchronous>, transform_indices = @transform_16, window_bounds = array<i64: 1, 128>}, {transform_indices = @transform_17, window_bounds = array<i64: 256, 128>}]} {
    %c0 = arith.constant 0 : index
    %c0_0 = arith.constant 0 : index
    %0 = vector.load %arg1[%c0, %c0_0] : memref<256x128xf32, #tpu.memory_space<vmem>>, vector<256x128xf32>
    %1 = arith.truncf %0 : vector<256x128xf32> to vector<256x128xbf16>
    %c0_1 = arith.constant 0 : index
    %c0_2 = arith.constant 0 : index
    %2 = vector.load %arg2[%c0_1, %c0_2] : memref<128x128xbf16, #tpu.memory_space<vmem>>, vector<128x128xbf16>
    %c0_3 = arith.constant 0 : index
    %c0_4 = arith.constant 0 : index
    %3 = vector.load %arg3[%c0_3, %c0_4] : memref<1x128xf32, #tpu.memory_space<vmem>>, vector<1x128xf32>
    %cst = arith.constant dense<0.000000e+00> : vector<256x128xf32>
    %4 = tpu.matmul %1, %2, %cst {dimension_numbers = #tpu.dot_dimension_numbers<[1], [0], [0], [1], [0, 0, 1, 1], [], []>} : vector<256x128xbf16>, vector<128x128xbf16>, vector<256x128xf32> -> vector<256x128xf32>
    %5 = vector.broadcast %3 : vector<1x128xf32> to vector<256x128xf32>
    %6 = arith.addf %4, %5 : vector<256x128xf32>
    %cst_5 = arith.constant 0.000000e+00 : f32
    %7 = vector.broadcast %cst_5 : f32 to vector<256x128xf32>
    %8 = arith.maximumf %6, %7 : vector<256x128xf32>
    %9 = arith.truncf %8 : vector<256x128xf32> to vector<256x128xbf16>
    %c0_6 = arith.constant 0 : index
    %c0_7 = arith.constant 0 : index
    %10 = vector.load %arg4[%c0_6, %c0_7] : memref<128x128xbf16, #tpu.memory_space<vmem>>, vector<128x128xbf16>
    %c0_8 = arith.constant 0 : index
    %c0_9 = arith.constant 0 : index
    %11 = vector.load %arg5[%c0_8, %c0_9] : memref<1x128xf32, #tpu.memory_space<vmem>>, vector<1x128xf32>
    %cst_10 = arith.constant dense<0.000000e+00> : vector<256x128xf32>
    %12 = tpu.matmul %9, %10, %cst_10 {dimension_numbers = #tpu.dot_dimension_numbers<[1], [0], [0], [1], [0, 0, 1, 1], [], []>} : vector<256x128xbf16>, vector<128x128xbf16>, vector<256x128xf32> -> vector<256x128xf32>
    %13 = vector.broadcast %11 : vector<1x128xf32> to vector<256x128xf32>
    %14 = arith.addf %12, %13 : vector<256x128xf32>
    %cst_11 = arith.constant 0.000000e+00 : f32
    %15 = vector.broadcast %cst_11 : f32 to vector<256x128xf32>
    %16 = arith.maximumf %14, %15 : vector<256x128xf32>
    %17 = arith.truncf %16 : vector<256x128xf32> to vector<256x128xbf16>
    %c0_12 = arith.constant 0 : index
    %c0_13 = arith.constant 0 : index
    %18 = vector.load %arg6[%c0_12, %c0_13] : memref<128x128xbf16, #tpu.memory_space<vmem>>, vector<128x128xbf16>
    %c0_14 = arith.constant 0 : index
    %c0_15 = arith.constant 0 : index
    %19 = vector.load %arg7[%c0_14, %c0_15] : memref<1x128xf32, #tpu.memory_space<vmem>>, vector<1x128xf32>
    %cst_16 = arith.constant dense<0.000000e+00> : vector<256x128xf32>
    %20 = tpu.matmul %17, %18, %cst_16 {dimension_numbers = #tpu.dot_dimension_numbers<[1], [0], [0], [1], [0, 0, 1, 1], [], []>} : vector<256x128xbf16>, vector<128x128xbf16>, vector<256x128xf32> -> vector<256x128xf32>
    %21 = vector.broadcast %19 : vector<1x128xf32> to vector<256x128xf32>
    %22 = arith.addf %20, %21 : vector<256x128xf32>
    %cst_17 = arith.constant 0.000000e+00 : f32
    %23 = vector.broadcast %cst_17 : f32 to vector<256x128xf32>
    %24 = arith.maximumf %22, %23 : vector<256x128xf32>
    %25 = arith.truncf %24 : vector<256x128xf32> to vector<256x128xbf16>
    %c0_18 = arith.constant 0 : index
    %c0_19 = arith.constant 0 : index
    %26 = vector.load %arg8[%c0_18, %c0_19] : memref<128x128xbf16, #tpu.memory_space<vmem>>, vector<128x128xbf16>
    %c0_20 = arith.constant 0 : index
    %c0_21 = arith.constant 0 : index
    %27 = vector.load %arg9[%c0_20, %c0_21] : memref<1x128xf32, #tpu.memory_space<vmem>>, vector<1x128xf32>
    %cst_22 = arith.constant dense<0.000000e+00> : vector<256x128xf32>
    %28 = tpu.matmul %25, %26, %cst_22 {dimension_numbers = #tpu.dot_dimension_numbers<[1], [0], [0], [1], [0, 0, 1, 1], [], []>} : vector<256x128xbf16>, vector<128x128xbf16>, vector<256x128xf32> -> vector<256x128xf32>
    %29 = vector.broadcast %27 : vector<1x128xf32> to vector<256x128xf32>
    %30 = arith.addf %28, %29 : vector<256x128xf32>
    %31 = arith.truncf %30 : vector<256x128xf32> to vector<256x128xbf16>
    %c0_23 = arith.constant 0 : index
    %c0_24 = arith.constant 0 : index
    %32 = vector.load %arg10[%c0_23, %c0_24] : memref<128x128xbf16, #tpu.memory_space<vmem>>, vector<128x128xbf16>
    %c0_25 = arith.constant 0 : index
    %c0_26 = arith.constant 0 : index
    %33 = vector.load %arg11[%c0_25, %c0_26] : memref<1x128xf32, #tpu.memory_space<vmem>>, vector<1x128xf32>
    %cst_27 = arith.constant dense<0.000000e+00> : vector<256x128xf32>
    %34 = tpu.matmul %31, %32, %cst_27 {dimension_numbers = #tpu.dot_dimension_numbers<[1], [0], [0], [1], [0, 0, 1, 1], [], []>} : vector<256x128xbf16>, vector<128x128xbf16>, vector<256x128xf32> -> vector<256x128xf32>
    %35 = vector.broadcast %33 : vector<1x128xf32> to vector<256x128xf32>
    %36 = arith.addf %34, %35 : vector<256x128xf32>
    %cst_28 = arith.constant 0.000000e+00 : f32
    %37 = vector.broadcast %cst_28 : f32 to vector<256x128xf32>
    %38 = arith.maximumf %36, %37 : vector<256x128xf32>
    %39 = arith.truncf %38 : vector<256x128xf32> to vector<256x128xbf16>
    %c0_29 = arith.constant 0 : index
    %c0_30 = arith.constant 0 : index
    %40 = vector.load %arg12[%c0_29, %c0_30] : memref<128x128xbf16, #tpu.memory_space<vmem>>, vector<128x128xbf16>
    %c0_31 = arith.constant 0 : index
    %c0_32 = arith.constant 0 : index
    %41 = vector.load %arg13[%c0_31, %c0_32] : memref<1x128xf32, #tpu.memory_space<vmem>>, vector<1x128xf32>
    %cst_33 = arith.constant dense<0.000000e+00> : vector<256x128xf32>
    %42 = tpu.matmul %39, %40, %cst_33 {dimension_numbers = #tpu.dot_dimension_numbers<[1], [0], [0], [1], [0, 0, 1, 1], [], []>} : vector<256x128xbf16>, vector<128x128xbf16>, vector<256x128xf32> -> vector<256x128xf32>
    %43 = vector.broadcast %41 : vector<1x128xf32> to vector<256x128xf32>
    %44 = arith.addf %42, %43 : vector<256x128xf32>
    %cst_34 = arith.constant 0.000000e+00 : f32
    %45 = vector.broadcast %cst_34 : f32 to vector<256x128xf32>
    %46 = arith.maximumf %44, %45 : vector<256x128xf32>
    %47 = arith.truncf %46 : vector<256x128xf32> to vector<256x128xbf16>
    %c0_35 = arith.constant 0 : index
    %c0_36 = arith.constant 0 : index
    %48 = vector.load %arg14[%c0_35, %c0_36] : memref<128x128xbf16, #tpu.memory_space<vmem>>, vector<128x128xbf16>
    %c0_37 = arith.constant 0 : index
    %c0_38 = arith.constant 0 : index
    %49 = vector.load %arg15[%c0_37, %c0_38] : memref<1x128xf32, #tpu.memory_space<vmem>>, vector<1x128xf32>
    %cst_39 = arith.constant dense<0.000000e+00> : vector<256x128xf32>
    %50 = tpu.matmul %47, %48, %cst_39 {dimension_numbers = #tpu.dot_dimension_numbers<[1], [0], [0], [1], [0, 0, 1, 1], [], []>} : vector<256x128xbf16>, vector<128x128xbf16>, vector<256x128xf32> -> vector<256x128xf32>
    %51 = vector.broadcast %49 : vector<1x128xf32> to vector<256x128xf32>
    %52 = arith.addf %50, %51 : vector<256x128xf32>
    %cst_40 = arith.constant 0.000000e+00 : f32
    %53 = vector.broadcast %cst_40 : f32 to vector<256x128xf32>
    %54 = arith.maximumf %52, %53 : vector<256x128xf32>
    %55 = arith.truncf %54 : vector<256x128xf32> to vector<256x128xbf16>
    %c0_41 = arith.constant 0 : index
    %c0_42 = arith.constant 0 : index
    %56 = vector.load %arg16[%c0_41, %c0_42] : memref<128x128xbf16, #tpu.memory_space<vmem>>, vector<128x128xbf16>
    %c0_43 = arith.constant 0 : index
    %c0_44 = arith.constant 0 : index
    %57 = vector.load %arg17[%c0_43, %c0_44] : memref<1x128xf32, #tpu.memory_space<vmem>>, vector<1x128xf32>
    %cst_45 = arith.constant dense<0.000000e+00> : vector<256x128xf32>
    %58 = tpu.matmul %55, %56, %cst_45 {dimension_numbers = #tpu.dot_dimension_numbers<[1], [0], [0], [1], [0, 0, 1, 1], [], []>} : vector<256x128xbf16>, vector<128x128xbf16>, vector<256x128xf32> -> vector<256x128xf32>
    %59 = vector.broadcast %57 : vector<1x128xf32> to vector<256x128xf32>
    %60 = arith.addf %58, %59 : vector<256x128xf32>
    %c0_46 = arith.constant 0 : index
    %c0_47 = arith.constant 0 : index
    %61 = vector.load %arg18[%c0_46, %c0_47] : memref<256x128xf32, #tpu.memory_space<vmem>>, vector<256x128xf32>
    tpu.vector_store %arg18[%c0_46, %c0_47], %60 {strides = array<i32>} : memref<256x128xf32, #tpu.memory_space<vmem>>, vector<256x128xf32>,
    return
  }
  func.func @transform_0(%arg0: i32) -> (i32, i32) {
    %c0_i32 = arith.constant 0 : i32
    %c0_i32_0 = arith.constant 0 : i32
    return %arg0, %c0_i32 : i32, i32
  }
  func.func @transform_1(%arg0: i32) -> (i32, i32) {
    %c0_i32 = arith.constant 0 : i32
    %c0_i32_0 = arith.constant 0 : i32
    %c0_i32_1 = arith.constant 0 : i32
    return %c0_i32, %c0_i32_0 : i32, i32
  }
  func.func @transform_2(%arg0: i32) -> (i32, i32) {
    %c0_i32 = arith.constant 0 : i32
    %c0_i32_0 = arith.constant 0 : i32
    %c0_i32_1 = arith.constant 0 : i32
    return %c0_i32, %c0_i32_0 : i32, i32
  }
  func.func @transform_3(%arg0: i32) -> (i32, i32) {
    %c0_i32 = arith.constant 0 : i32
    %c0_i32_0 = arith.constant 0 : i32
    %c0_i32_1 = arith.constant 0 : i32
    return %c0_i32, %c0_i32_0 : i32, i32
  }
  func.func @transform_4(%arg0: i32) -> (i32, i32) {
    %c0_i32 = arith.constant 0 : i32
    %c0_i32_0 = arith.constant 0 : i32
    %c0_i32_1 = arith.constant 0 : i32
    return %c0_i32, %c0_i32_0 : i32, i32
  }
  func.func @transform_5(%arg0: i32) -> (i32, i32) {
    %c0_i32 = arith.constant 0 : i32
    %c0_i32_0 = arith.constant 0 : i32
    %c0_i32_1 = arith.constant 0 : i32
    return %c0_i32, %c0_i32_0 : i32, i32
  }
  func.func @transform_6(%arg0: i32) -> (i32, i32) {
    %c0_i32 = arith.constant 0 : i32
    %c0_i32_0 = arith.constant 0 : i32
    %c0_i32_1 = arith.constant 0 : i32
    return %c0_i32, %c0_i32_0 : i32, i32
  }
  func.func @transform_7(%arg0: i32) -> (i32, i32) {
    %c0_i32 = arith.constant 0 : i32
    %c0_i32_0 = arith.constant 0 : i32
    %c0_i32_1 = arith.constant 0 : i32
    return %c0_i32, %c0_i32_0 : i32, i32
  }
  func.func @transform_8(%arg0: i32) -> (i32, i32) {
    %c0_i32 = arith.constant 0 : i32
    %c0_i32_0 = arith.constant 0 : i32
    %c0_i32_1 = arith.constant 0 : i32
    return %c0_i32, %c0_i32_0 : i32, i32
  }
  func.func @transform_9(%arg0: i32) -> (i32, i32) {
    %c0_i32 = arith.constant 0 : i32
    %c0_i32_0 = arith.constant 0 : i32
    %c0_i32_1 = arith.constant 0 : i32
    return %c0_i32, %c0_i32_0 : i32, i32
  }
  func.func @transform_10(%arg0: i32) -> (i32, i32) {
    %c0_i32 = arith.constant 0 : i32
    %c0_i32_0 = arith.constant 0 : i32
    %c0_i32_1 = arith.constant 0 : i32
    return %c0_i32, %c0_i32_0 : i32, i32
  }
  func.func @transform_11(%arg0: i32) -> (i32, i32) {
    %c0_i32 = arith.constant 0 : i32
    %c0_i32_0 = arith.constant 0 : i32
    %c0_i32_1 = arith.constant 0 : i32
    return %c0_i32, %c0_i32_0 : i32, i32
  }
  func.func @transform_12(%arg0: i32) -> (i32, i32) {
    %c0_i32 = arith.constant 0 : i32
    %c0_i32_0 = arith.constant 0 : i32
    %c0_i32_1 = arith.constant 0 : i32
    return %c0_i32, %c0_i32_0 : i32, i32
  }
  func.func @transform_13(%arg0: i32) -> (i32, i32) {
    %c0_i32 = arith.constant 0 : i32
    %c0_i32_0 = arith.constant 0 : i32
    %c0_i32_1 = arith.constant 0 : i32
    return %c0_i32, %c0_i32_0 : i32, i32
  }
  func.func @transform_14(%arg0: i32) -> (i32, i32) {
    %c0_i32 = arith.constant 0 : i32
    %c0_i32_0 = arith.constant 0 : i32
    %c0_i32_1 = arith.constant 0 : i32
    return %c0_i32, %c0_i32_0 : i32, i32
  }
  func.func @transform_15(%arg0: i32) -> (i32, i32) {
    %c0_i32 = arith.constant 0 : i32
    %c0_i32_0 = arith.constant 0 : i32
    %c0_i32_1 = arith.constant 0 : i32
    return %c0_i32, %c0_i32_0 : i32, i32
  }
  func.func @transform_16(%arg0: i32) -> (i32, i32) {
    %c0_i32 = arith.constant 0 : i32
    %c0_i32_0 = arith.constant 0 : i32
    %c0_i32_1 = arith.constant 0 : i32
    return %c0_i32, %c0_i32_0 : i32, i32
  }
  func.func @transform_17(%arg0: i32) -> (i32, i32) {
    %c0_i32 = arith.constant 0 : i32
    %c0_i32_0 = arith.constant 0 : i32
    return %arg0, %c0_i32 : i32, i32
  }
}

</mosaic_0001>

<bundles_post_ra>
// kernel: autoencoder_forward.1
= control target key start
LH: loop header
LB: loop body
LE: loop exit
PB: predicated region body
PF: predicated region fallthrough
CT: control target
= control target key end

     0   :  { %s3451_s0 = inlined_call_operand.vmem [shape: f32[512,128], index: 0, kind: input, shape index: {}]   ;;  %s3452_s1 = inlined_call_operand.vmem [shape: bf16[128,128], index: 1, kind: input, shape index: {}]   ;;  %s3453_s2 = inlined_call_operand.vmem [shape: f32[1,128], index: 2, kind: input, shape index: {}]   ;;  %s3454_s3 = inlined_call_operand.vmem [shape: bf16[128,128], index: 3, kind: input, shape index: {}]   ;;  %s3455_s4 = inlined_call_operand.vmem [shape: f32[1,128], index: 4, kind: input, shape index: {}]   ;;  %s3456_s5 = inlined_call_operand.vmem [shape: bf16[128,128], index: 5, kind: input, shape index: {}]   ;;  %s3457_s6 = inlined_call_operand.vmem [shape: f32[1,128], index: 6, kind: input, shape index: {}]   ;;  %s3458_s7 = inlined_call_operand.vmem [shape: bf16[128,128], index: 7, kind: input, shape index: {}]   ;;  %s3459_s8 = inlined_call_operand.vmem [shape: f32[1,128], index: 8, kind: input, shape index: {}]   ;;  %s3460_s9 = inlined_call_operand.vmem [shape: bf16[128,128], index: 9, kind: input, shape index: {}]   ;;  %s3461_s10 = inlined_call_operand.vmem [shape: f32[1,128], index: 10, kind: input, shape index: {}]   ;;  %s3462_s11 = inlined_call_operand.vmem [shape: bf16[128,128], index: 11, kind: input, shape index: {}]   ;;  %s3463_s12 = inlined_call_operand.vmem [shape: f32[1,128], index: 12, kind: input, shape index: {}]   ;;  %s3464_s13 = inlined_call_operand.vmem [shape: bf16[128,128], index: 13, kind: input, shape index: {}]   ;;  %s3465_s14 = inlined_call_operand.vmem [shape: f32[1,128], index: 14, kind: input, shape index: {}]   ;;  %s3466_s15 = inlined_call_operand.vmem [shape: bf16[128,128], index: 15, kind: input, shape index: {}]   ;;  %s3467_s16 = inlined_call_operand.vmem [shape: f32[1,128], index: 16, kind: input, shape index: {}]   ;;  %s3468_s17 = inlined_call_operand.hbm [shape: f32[512,128], index: 17, kind: output, shape index: {}]  }
   0x1   :  { %3477 = sst [smem:[#allocation11_spill]] %s3451_s0 }
   0x2   :  { %3478 = sst [smem:[#allocation12_spill]] %s3452_s1 }
   0x3   :  { %3479 = sst [smem:[#allocation13_spill]] %s3453_s2 }
   0x4   :  { %3480 = sst [smem:[#allocation14_spill]] %s3454_s3 }
   0x5   :  { %3481 = sst [smem:[#allocation15_spill]] %s3455_s4 }
   0x6   :  { %3482 = sst [smem:[#allocation16_spill]] %s3468_s17 }
   0x7   :  { %22 = vsyncpa [#allocation3], 0 }
   0x8   :  { %24 = vsyncpa [#allocation3 + $0x1], 0  ;;  %s2806_s24 = smov 0   ;;  %s2808_s25 = smov 0  }
   0x9   :  { %s2810_s26 = smov 0   ;;  %s2812_s27 = smov 0  }
   0xa LB: > { %3483 = sst [smem:[#allocation5_spill]] %s2700_s24  ;;  %s2827_s28 = sadd.s32 4294967295, %s2712_s27   ;;  %s2712_s27 = sphi %s2812_s27, %s3500_s27   ;;  %s2708_s26 = sphi %s2810_s26, %s3502_s26   ;;  %s2704_s25 = sphi %s2808_s25, %s3504_s25   ;;  %s2700_s24 = sphi %s2806_s24, %s3503_s24  }
   0xb   : > { %3484 = sst [smem:[#allocation6_spill]] %s2708_s26  ;;  %s2268_s29 = sadd.s32 4294967294, %s2712_s27  }
   0xc   : > { %3485 = sst [smem:[#allocation7_spill]] %s2712_s27  ;;  %s2831_s0 = sadd.s32 1, %s2712_s27  }
   0xd   : > { %3486 = sst [smem:[#allocation8_spill]] %s2831_s0  ;;  %s399_s30 = sadd.s32 1, %s2708_s26 }
   0xe   : > { %s396_s18 = ssub.s32 %s2712_s27, %s2831_s0  ;;  %p409_p0 = scmp.ne.s32.totalorder %s2708_s26, %s2704_s25 }
   0xf   : > { %p397_p1 = scmp.eq.s32.totalorder %s396_s18, 0  ;;  %p410_p2 = scmp.eq.s32.totalorder %s2827_s28, 1 }
  0x10   : > { %p415_p3 = scmp.ne.s32.totalorder %s2704_s25, %s2700_s24  ;;  %p416_p4 = scmp.eq.s32.totalorder %s2268_s29, 1 }
  0x11   : > { %s2842_s19 = scalar_select %p397_p1, %s2708_s26, %s399_s30  }
  0x12   : > { %p2844_p5 = por %p410_p2, %p409_p0  ;;  %p2848_p6 = por %p416_p4, %p415_p3 }
  0x13   : > { %3487 = sst [smem:[#allocation9_spill]] %s2842_s19  ;;  %p2271_p7 = scmp.ge.s32.totalorder %s2712_s27, 1 }
  0x14   : > { %s3489_s20 = scalar_select %p2848_p6, 1, 0 }
  0x15   : > { %p491_p8 = scmp.lt.s32.totalorder %s2712_s27, 3 }
  0x16   : > { %3490 = sst [smem:[#allocation10_spill]] %s3489_s20 }
  0x17   : > { %p492_p9 = pnand %p2271_p7, %p491_p8 }
  0x18   : > { %s3491_s23 = sld [smem:[#allocation12_spill]] (!%p492_p9)  ;;  %s2273_s26 = sshll.u32 (!%p492_p9), %s2827_s28, 5 }
  0x19   : > { %495 = sbr.rel (%p492_p9) target bundleno = 1444 (0x5a4), region = 88  ;;  %p544_p10 = scmp.lt.s32.totalorder (!%p492_p9), %s2273_s26, 63 }
  0x1a   : > { %s3492_s27 = sld [smem:[#allocation11_spill]] (!%p492_p9)  ;;  %s540_s20 = sand.u32 (!%p492_p9), 1, %s2704_s25  }
  0x1b   : > { %s3493_s3 = sld [smem:[#allocation14_spill]] (!%p492_p9)  ;;  %s2272_s21 = sshll.u32 (!%p492_p9), %s540_s20, 8 }
  0x1c   : > { %s3494_s2 = sld [smem:[#allocation13_spill]] (!%p492_p9) }
  0x1d   : > { %s3495_s4 = sld [smem:[#allocation15_spill]] (!%p492_p9) }
  0x1e   : > { %v2543_v0 = vld [vmem:[%s3491_s23 + $0x38] sm:$0xff]  ;;  %v2542_v1 = vld [vmem:[%s3491_s23 + $0x30] sm:$0xff]  ;;  %v2541_v2 = vld [vmem:[%s3491_s23 + $0x28] sm:$0xff]  ;;  %s3506_s26 = smov (!%p544_p10, %s2273_s26), 63  ;;  %s3496_s30 = sld [smem:[#allocation16_spill]] }
  0x1f   : > { %666 = vmatpush.bf16.msra.mxu0 %v2543_v0  ;;  %v2540_v3 = vld [vmem:[%s3491_s23 + $0x20] sm:$0xff]  ;;  %v2539_v4 = vld [vmem:[%s3491_s23 + $0x18] sm:$0xff]  ;;  %v2538_v5 = vld [vmem:[%s3491_s23 + $0x10] sm:$0xff]  ;;  %s2274_s19 = sshll.u32 %s3506_s26, 3 }
  0x20   : > { %v2537_v6 = vld [vmem:[%s3491_s23 + $0x8] sm:$0xff]  ;;  %s2879_s17 = scalar_lea.vmem %s3492_s27, %s2274_s19  ;;  %v2536_v7 = vld [vmem:[%s3491_s23] sm:$0xff]  ;;  %s2600_s27 = sshll.u32 %s2827_s28, 8 }
  0x21   : > { %v550_v8 = vld [vmem:[%s2879_s17] sm:$0xff]  ;;  %v551_v9 = vld [vmem:[%s2879_s17 + $0x8] sm:$0xff]  ;;  %v552_v11 = vld [vmem:[%s2879_s17 + $0x10] sm:$0xff] }
  0x22   : > { %v582_v10 = vpack.c.bf16 %v551_v9, %v550_v8  ;;  %v553_v12 = vld [vmem:[%s2879_s17 + $0x18] sm:$0xff]  ;;  %v554_v14 = vld [vmem:[%s2879_s17 + $0x20] sm:$0xff]  ;;  %v555_v15 = vld [vmem:[%s2879_s17 + $0x28] sm:$0xff] }
  0x23   : > { %667 = vmatpush.bf16.msra.mxu0 %v2542_v1  ;;  %v583_v13 = vpack.c.bf16 %v553_v12, %v552_v11  ;;  %v584_v16 = vpack.c.bf16 %v555_v15, %v554_v14  ;;  %v556_v17 = vld [vmem:[%s2879_s17 + $0x30] sm:$0xff]  ;;  %v557_v18 = vld [vmem:[%s2879_s17 + $0x38] sm:$0xff]  ;;  %v558_v20 = vld [vmem:[%s2879_s17 + $0x40] sm:$0xff] }
  0x24   : > { %v585_v19 = vpack.c.bf16 %v557_v18, %v556_v17  ;;  %v559_v21 = vld [vmem:[%s2879_s17 + $0x48] sm:$0xff]  ;;  %v2551_v23 = vld [vmem:[%s3493_s3 + $0x38] sm:$0xff]  ;;  %v560_v24 = vld [vmem:[%s2879_s17 + $0x50] sm:$0xff]  ;;  %s2202_s19 = scalar_lea.hbm %s3496_s30, %s2600_s27  ;;  %s2670_s22 = scalar_lea.hbm %s3496_s30, 512 }
  0x25   : > { %v586_v22 = vpack.c.bf16 %v559_v21, %v558_v20  ;;  %871 = vmatpush.bf16.msra.mxu1 %v2551_v23  ;;  %v561_v25 = vld [vmem:[%s2879_s17 + $0x58] sm:$0xff]  ;;  %v2550_v27 = vld [vmem:[%s3493_s3 + $0x30] sm:$0xff]  ;;  %v2549_v28 = vld [vmem:[%s3493_s3 + $0x28] sm:$0xff]  ;;  %s2205_s0 = sshll.u32 %s2202_s19, 4  ;;  %s2206_s0 = int_to_ptr.hbm [resolvable:$true] %s2205_s0 }
  0x26   : > { %v587_v26 = vpack.c.bf16 %v561_v25, %v560_v24  ;;  %v2548_v29 = vld [vmem:[%s3493_s3 + $0x20] sm:$0xff]  ;;  %v563_v31 = vld [vmem:[%s2879_s17 + $0x68] sm:$0xff]  ;;  %v2547_v32 = vld [vmem:[%s3493_s3 + $0x18] sm:$0xff]  ;;  %s2664_s28 = sshra.s32 %s2206_s0, 4  ;;  %s2665_s28 = int_to_ptr.hbm [resolvable:$true] %s2664_s28 }
  0x27   : > { %668 = vmatpush.bf16.msra.mxu0 %v2541_v2  ;;  %v562_v30 = vld [vmem:[%s2879_s17 + $0x60] sm:$0xff]  ;;  %v2546_v34 = vld [vmem:[%s3493_s3 + $0x10] sm:$0xff]  ;;  %v2545_v35 = vld [vmem:[%s3493_s3 + $0x8] sm:$0xff]  ;;  %s2666_s26 = scalar_lea.hbm %s2665_s28, 256  ;;  %p2671_p0 = scmp.lt.s32.totalorder %s2665_s28, %s3496_s30 }
  0x28   : > { %v588_v33 = vpack.c.bf16 %v563_v31, %v562_v30  ;;  %v2544_v36 = vld [vmem:[%s3493_s3] sm:$0xff]  ;;  %v564_v37 = vld [vmem:[%s2879_s17 + $0x70] sm:$0xff]  ;;  %v565_v38 = vld [vmem:[%s2879_s17 + $0x78] sm:$0xff]  ;;  %p2667_p11 = scmp.ne.s32.totalorder %s2665_s28, %s2666_s26  ;;  %p2672_p1 = scmp.lt.s32.totalorder %s2670_s22, %s2666_s26 }
  0x29   : > { %872 = vmatpush.bf16.msra.mxu1 %v2550_v27  ;;  %v589_v39 = vpack.c.bf16 %v565_v38, %v564_v37  ;;  %v566_v40 = vld [vmem:[%s2879_s17 + $0x80] sm:$0xff]  ;;  %v567_v41 = vld [vmem:[%s2879_s17 + $0x88] sm:$0xff]  ;;  %v568_v50 = vld [vmem:[%s2879_s17 + $0x90] sm:$0xff] }
  0x2a   : > { %v590_v42 = vpack.c.bf16 %v567_v41, %v566_v40  ;;  %v2929_v44 = vld [vmem:[%s3494_s2] ss:$0 sm:$0xff]  ;;  %v569_v51 = vld [vmem:[%s2879_s17 + $0x98] sm:$0xff]  ;;  %v571_v61 = vld [vmem:[%s2879_s17 + $0xa8] sm:$0xff]  ;;  %p2668_p12 = pnand %p2667_p11, %p2844_p5  ;;  %p2673_p2 = por %p2672_p1, %p2671_p0 }
  0x2b   : > { %669 = vmatpush.bf16.msra.mxu0 %v2540_v3  ;;  %v591_v53 = vpack.c.bf16 %v569_v51, %v568_v50  ;;  %v570_v60 = vld [vmem:[%s2879_s17 + $0xa0] sm:$0xff]  ;;  %v575_v17 = vld [vmem:[%s2879_s17 + $0xc8] sm:$0xff]  ;;  %v577_v27 = vld [vmem:[%s2879_s17 + $0xd8] sm:$0xff] }
  0x2c   : > { %v592_v63 = vpack.c.bf16 %v571_v61, %v570_v60  ;;  %v578_v37 = vld [vmem:[%s2879_s17 + $0xe0] sm:$0xff]  ;;  %v579_v38 = vld [vmem:[%s2879_s17 + $0xe8] sm:$0xff]  ;;  %v2558_v40 = vld [vmem:[%s3456_s5 + $0x30] sm:$0xff]  ;;  %p2669_p13 = pneg %p2668_p12 }
  0x2d   : > { %873 = vmatpush.bf16.msra.mxu1 %v2549_v28  ;;  %v596_v41 = vpack.c.bf16 %v579_v38, %v578_v37 }
  0x2e   : > { %p2674_p3 = pnand %p2673_p2, %p2669_p13 }
  0x2f   : > { %670 = vmatpush.bf16.msra.mxu0 %v2539_v4 }
  0x31   : > { %874 = vmatpush.bf16.msra.mxu1 %v2548_v29 }
  0x33   : > { %671 = vmatpush.bf16.msra.mxu0 %v2538_v5 }
  0x35   : > { %875 = vmatpush.bf16.msra.mxu1 %v2547_v32 }
  0x37   : > { %672 = vmatpush.bf16.msra.mxu0 %v2537_v6  ;;  %v572_v6 = vld [vmem:[%s2879_s17 + $0xb0] sm:$0xff] }
  0x39   : > { %876 = vmatpush.bf16.msra.mxu1 %v2546_v34  ;;  %v2559_v34 = vld [vmem:[%s3456_s5 + $0x38] sm:$0xff] }
  0x3a   : > { %1076 = vmatpush.bf16.msra.mxu2 %v2559_v34 }
  0x3b   : > { %673 = vmatpush.bf16.msra.mxu0 %v2536_v7  ;;  %v573_v7 = vld [vmem:[%s2879_s17 + $0xb8] sm:$0xff] }
  0x3c   : > { %v593_v9 = vpack.c.bf16 %v573_v7, %v572_v6 }
  0x3d   : > { %877 = vmatpush.bf16.msra.mxu1 %v2545_v35 }
  0x3e   : > { %674 = vmatmul.bf16.vlgmr.msra.gmra.mxu0 %v582_v10  ;;  %1077 = vmatpush.bf16.msra.mxu2 %v2558_v40 }
  0x41   : > { %878 = vmatpush.bf16.msra.mxu1 %v2544_v36 }
  0x4e   : > { %679 = vmatmul.bf16.gmra.mxu0 %v583_v13 }
  0x5e   : > { %684 = vmatmul.bf16.gmra.mxu0 %v584_v16  ;;  %v574_v16 = vld [vmem:[%s2879_s17 + $0xc0] sm:$0xff] }
  0x6e   : > { %689 = vmatmul.bf16.gmra.mxu0 %v585_v19  ;;  %v594_v19 = vpack.c.bf16 %v575_v17, %v574_v16 }
  0x7e   : > { %694 = vmatmul.bf16.gmra.mxu0 %v586_v22 }
  0x8e   : > { %699 = vmatmul.bf16.gmra.mxu0 %v587_v26  ;;  %v576_v26 = vld [vmem:[%s2879_s17 + $0xd0] sm:$0xff] }
  0x8f   : > { %v595_v29 = vpack.c.bf16 %v577_v27, %v576_v26 }
  0x9e   : > { %704 = vmatmul.bf16.gmra.mxu0 %v588_v33 }
  0xae   : > { %709 = vmatmul.bf16.gmra.mxu0 %v589_v39 }
  0xbb   : > { %v675_v43 = vpop.f32.mrf.mxu0 }
  0xbc   : > { %v676_v45 = vadd.f32 %v2929_v44, %v675_v43  ;;  %v2557_v43 = vld [vmem:[%s3456_s5 + $0x28] sm:$0xff] }
  0xbd   : > { %1078 = vmatpush.bf16.msra.mxu2 %v2557_v43 }
  0xbe   : > { %714 = vmatmul.bf16.gmra.mxu0 %v590_v42  ;;  %v755_v48 = vmax.f32 %v676_v45, 0.0  ;;  %v2556_v45 = vld [vmem:[%s3456_s5 + $0x20] sm:$0xff] }
  0xc1   : > { %1079 = vmatpush.bf16.msra.mxu2 %v2556_v45 }
  0xc3   : > { %v677_v46 = vpop.f32.mrf.mxu0 }
  0xc4   : > { %v678_v47 = vadd.f32 %v2929_v44, %v677_v46 }
  0xc6   : > { %v756_v49 = vmax.f32 %v678_v47, 0.0 }
  0xc8   : > { %v787_v52 = vpack.c.bf16 %v756_v49, %v755_v48  ;;  %v2555_v49 = vld [vmem:[%s3456_s5 + $0x18] sm:$0xff] }
  0xc9   : > { %1080 = vmatpush.bf16.msra.mxu2 %v2555_v49 }
  0xca   : > { %879 = vmatmul.bf16.vlgmr.msra.gmra.mxu1 %v787_v52  ;;  %v580_v52 = vld [vmem:[%s2879_s17 + $0xf0] sm:$0xff] }
  0xcb   : > { %v680_v54 = vpop.f32.mrf.mxu0 }
  0xcc   : > { %v681_v55 = vadd.f32 %v2929_v44, %v680_v54 }
  0xce   : > { %719 = vmatmul.bf16.gmra.mxu0 %v591_v53  ;;  %v757_v58 = vmax.f32 %v681_v55, 0.0  ;;  %v581_v53 = vld [vmem:[%s2879_s17 + $0xf8] sm:$0xff]  ;;  %v2554_v55 = vld [vmem:[%s3456_s5 + $0x10] sm:$0xff]  ;;  %s3338_s17 = scalar_lea.vmem [#allocation2], %s2272_s21  ;;  %s2191_s21 = scalar_lea.sflag [#allocation3], %s540_s20 }
  0xcf   : > { %1081 = vmatpush.bf16.msra.mxu2 %v2554_v55  ;;  %v2574_v55 = vld [vmem:[%s3460_s9 + $0x30] sm:$0xff]  ;;  %s2203_s18 = sshll.u32 %s3338_s17, 4  ;;  %s2204_s18 = int_to_ptr.vmem [resolvable:$true] %s2203_s18 }
  0xd3   : > { %v682_v56 = vpop.f32.mrf.mxu0 }
  0xd4   : > { %v683_v57 = vadd.f32 %v2929_v44, %v682_v56  ;;  %v597_v56 = vpack.c.bf16 %v581_v53, %v580_v52 }
  0xd6   : > { %v758_v59 = vmax.f32 %v683_v57, 0.0 }
  0xd8   : > { %v788_v62 = vpack.c.bf16 %v758_v59, %v757_v58  ;;  %v2553_v58 = vld [vmem:[%s3456_s5 + $0x8] sm:$0xff]  ;;  %v2552_v59 = vld [vmem:[%s3456_s5] sm:$0xff] }
  0xd9   : > { %1082 = vmatpush.bf16.msra.mxu2 %v2553_v58 }
  0xda   : > { %884 = vmatmul.bf16.gmra.mxu1 %v788_v62 }
  0xdb   : > { %v685_v0 = vpop.f32.mrf.mxu0 }
  0xdc   : > { %v686_v1 = vadd.f32 %v2929_v44, %v685_v0 }
  0xdd   : > { %1083 = vmatpush.bf16.msra.mxu2 %v2552_v59 }
  0xde   : > { %724 = vmatmul.bf16.gmra.mxu0 %v592_v63  ;;  %v759_v4 = vmax.f32 %v686_v1, 0.0 }
  0xe3   : > { %v687_v2 = vpop.f32.mrf.mxu0 }
  0xe4   : > { %v688_v3 = vadd.f32 %v2929_v44, %v687_v2 }
  0xe6   : > { %v760_v5 = vmax.f32 %v688_v3, 0.0 }
  0xe8   : > { %v789_v8 = vpack.c.bf16 %v760_v5, %v759_v4 }
  0xea   : > { %889 = vmatmul.bf16.gmra.mxu1 %v789_v8 }
  0xeb   : > { %v690_v10 = vpop.f32.mrf.mxu0 }
  0xec   : > { %v691_v11 = vadd.f32 %v2929_v44, %v690_v10  ;;  %v2990_v10 = vld [vmem:[%s3495_s4] ss:$0 sm:$0xff] }
  0xee   : > { %729 = vmatmul.bf16.gmra.mxu0 %v593_v9  ;;  %v761_v14 = vmax.f32 %v691_v11, 0.0 }
  0xf3   : > { %v692_v12 = vpop.f32.mrf.mxu0 }
  0xf4   : > { %v693_v13 = vadd.f32 %v2929_v44, %v692_v12 }
  0xf6   : > { %v762_v15 = vmax.f32 %v693_v13, 0.0 }
  0xf8   : > { %v790_v18 = vpack.c.bf16 %v762_v15, %v761_v14 }
  0xfa   : > { %894 = vmatmul.bf16.gmra.mxu1 %v790_v18 }
  0xfb   : > { %v695_v20 = vpop.f32.mrf.mxu0 }
  0xfc   : > { %v696_v21 = vadd.f32 %v2929_v44, %v695_v20 }
  0xfe   : > { %734 = vmatmul.bf16.gmra.mxu0 %v594_v19  ;;  %v763_v24 = vmax.f32 %v696_v21, 0.0 }
 0x103   : > { %v697_v22 = vpop.f32.mrf.mxu0 }
 0x104   : > { %v698_v23 = vadd.f32 %v2929_v44, %v697_v22 }
 0x106   : > { %v764_v25 = vmax.f32 %v698_v23, 0.0 }
 0x108   : > { %v791_v28 = vpack.c.bf16 %v764_v25, %v763_v24  ;;  %v2575_v25 = vld [vmem:[%s3460_s9 + $0x38] sm:$0xff] }
 0x109   : > { %1454 = vmatpush.bf16.msrb.mxu0 %v2575_v25 }
 0x10a   : > { %899 = vmatmul.bf16.gmra.mxu1 %v791_v28 }
 0x10b   : > { %v700_v30 = vpop.f32.mrf.mxu0 }
 0x10c   : > { %v701_v31 = vadd.f32 %v2929_v44, %v700_v30 }
 0x10d   : > { %1455 = vmatpush.bf16.msrb.mxu0 %v2574_v55 }
 0x10e   : > { %739 = vmatmul.bf16.gmra.mxu0 %v595_v29  ;;  %v765_v35 = vmax.f32 %v701_v31, 0.0 }
 0x113   : > { %v702_v32 = vpop.f32.mrf.mxu0 }
 0x114   : > { %v703_v33 = vadd.f32 %v2929_v44, %v702_v32 }
 0x116   : > { %v766_v36 = vmax.f32 %v703_v33, 0.0 }
 0x118   : > { %v792_v39 = vpack.c.bf16 %v766_v36, %v765_v35 }
 0x11a   : > { %904 = vmatmul.bf16.gmra.mxu1 %v792_v39 }
 0x11b   : > { %v705_v42 = vpop.f32.mrf.mxu0 }
 0x11c   : > { %v706_v46 = vadd.f32 %v2929_v44, %v705_v42 }
 0x11e   : > { %744 = vmatmul.bf16.gmra.mxu0 %v596_v41  ;;  %v767_v50 = vmax.f32 %v706_v46, 0.0 }
 0x123   : > { %v707_v47 = vpop.f32.mrf.mxu0 }
 0x124   : > { %v708_v48 = vadd.f32 %v2929_v44, %v707_v47 }
 0x126   : > { %v768_v51 = vmax.f32 %v708_v48, 0.0 }
 0x128   : > { %v793_v54 = vpack.c.bf16 %v768_v51, %v767_v50 }
 0x12a   : > { %909 = vmatmul.bf16.gmra.mxu1 %v793_v54 }
 0x12b   : > { %v710_v57 = vpop.f32.mrf.mxu0 }
 0x12c   : > { %v711_v60 = vadd.f32 %v2929_v44, %v710_v57 }
 0x12e   : > { %749 = vmatmul.bf16.gmra.mxu0 %v597_v56  ;;  %v769_v63 = vmax.f32 %v711_v60, 0.0 }
 0x133   : > { %v712_v61 = vpop.f32.mrf.mxu0 }
 0x134   : > { %v713_v62 = vadd.f32 %v2929_v44, %v712_v61 }
 0x136   : > { %v770_v0 = vmax.f32 %v713_v62, 0.0 }
 0x138   : > { %v794_v1 = vpack.c.bf16 %v770_v0, %v769_v63 }
 0x13a   : > { %914 = vmatmul.bf16.gmra.mxu1 %v794_v1 }
 0x13b   : > { %v715_v2 = vpop.f32.mrf.mxu0 }
 0x13c   : > { %v716_v3 = vadd.f32 %v2929_v44, %v715_v2 }
 0x13e   : > { %v771_v6 = vmax.f32 %v716_v3, 0.0 }
 0x143   : > { %v717_v4 = vpop.f32.mrf.mxu0 }
 0x144   : > { %v718_v5 = vadd.f32 %v2929_v44, %v717_v4 }
 0x146   : > { %v772_v7 = vmax.f32 %v718_v5, 0.0 }
 0x147   : > { %v880_v8 = vpop.f32.mrf.mxu1 }
 0x148   : > { %v795_v9 = vpack.c.bf16 %v772_v7, %v771_v6  ;;  %v881_v12 = vadd.f32 %v2990_v10, %v880_v8 }
 0x14a   : > { %919 = vmatmul.bf16.gmra.mxu1 %v795_v9  ;;  %v960_v15 = vmax.f32 %v881_v12, 0.0 }
 0x14b   : > { %v720_v11 = vpop.f32.mrf.mxu0 }
 0x14c   : > { %v721_v16 = vadd.f32 %v2929_v44, %v720_v11 }
 0x14e   : > { %v773_v21 = vmax.f32 %v721_v16, 0.0 }
 0x14f   : > { %v882_v13 = vpop.f32.mrf.mxu1 }
 0x150   : > { %v883_v14 = vadd.f32 %v2990_v10, %v882_v13 }
 0x152   : > { %v961_v17 = vmax.f32 %v883_v14, 0.0 }
 0x153   : > { %v722_v18 = vpop.f32.mrf.mxu0 }
 0x154   : > { %v723_v19 = vadd.f32 %v2929_v44, %v722_v18  ;;  %v992_v20 = vpack.c.bf16 %v961_v17, %v960_v15 }
 0x156   : > { %v774_v22 = vmax.f32 %v723_v19, 0.0  ;;  %1084 = vmatmul.bf16.vlgmr.msra.gmra.mxu2 %v992_v20 }
 0x157   : > { %v885_v23 = vpop.f32.mrf.mxu1 }
 0x158   : > { %v796_v24 = vpack.c.bf16 %v774_v22, %v773_v21  ;;  %v886_v27 = vadd.f32 %v2990_v10, %v885_v23  ;;  %v2573_v21 = vld [vmem:[%s3460_s9 + $0x28] sm:$0xff] }
 0x159   : > { %1456 = vmatpush.bf16.msrb.mxu0 %v2573_v21 }
 0x15a   : > { %924 = vmatmul.bf16.gmra.mxu1 %v796_v24  ;;  %v962_v30 = vmax.f32 %v886_v27, 0.0 }
 0x15b   : > { %v725_v26 = vpop.f32.mrf.mxu0 }
 0x15c   : > { %v726_v31 = vadd.f32 %v2929_v44, %v725_v26 }
 0x15e   : > { %v775_v36 = vmax.f32 %v726_v31, 0.0 }
 0x15f   : > { %v887_v28 = vpop.f32.mrf.mxu1 }
 0x160   : > { %v888_v29 = vadd.f32 %v2990_v10, %v887_v28 }
 0x162   : > { %v963_v32 = vmax.f32 %v888_v29, 0.0 }
 0x163   : > { %v727_v33 = vpop.f32.mrf.mxu0 }
 0x164   : > { %v728_v34 = vadd.f32 %v2929_v44, %v727_v33  ;;  %v993_v35 = vpack.c.bf16 %v963_v32, %v962_v30 }
 0x166   : > { %v776_v37 = vmax.f32 %v728_v34, 0.0  ;;  %1089 = vmatmul.bf16.gmra.mxu2 %v993_v35  ;;  %v2567_v35 = vld [vmem:[%s3458_s7 + $0x38] sm:$0xff] }
 0x167   : > { %v890_v38 = vpop.f32.mrf.mxu1  ;;  %1281 = vmatpush.bf16.msra.mxu3 %v2567_v35 }
 0x168   : > { %v797_v39 = vpack.c.bf16 %v776_v37, %v775_v36  ;;  %v891_v41 = vadd.f32 %v2990_v10, %v890_v38  ;;  %v2566_v37 = vld [vmem:[%s3458_s7 + $0x30] sm:$0xff] }
 0x16a   : > { %929 = vmatmul.bf16.gmra.mxu1 %v797_v39  ;;  %v964_v45 = vmax.f32 %v891_v41, 0.0  ;;  %v2565_v41 = vld [vmem:[%s3458_s7 + $0x28] sm:$0xff] }
 0x16b   : > { %v730_v40 = vpop.f32.mrf.mxu0  ;;  %1282 = vmatpush.bf16.msra.mxu3 %v2566_v37 }
 0x16c   : > { %v731_v46 = vadd.f32 %v2929_v44, %v730_v40 }
 0x16e   : > { %v777_v51 = vmax.f32 %v731_v46, 0.0 }
 0x16f   : > { %v892_v42 = vpop.f32.mrf.mxu1  ;;  %1283 = vmatpush.bf16.msra.mxu3 %v2565_v41 }
 0x170   : > { %v893_v43 = vadd.f32 %v2990_v10, %v892_v42 }
 0x172   : > { %v965_v47 = vmax.f32 %v893_v43, 0.0 }
 0x173   : > { %v732_v48 = vpop.f32.mrf.mxu0 }
 0x174   : > { %v733_v49 = vadd.f32 %v2929_v44, %v732_v48  ;;  %v994_v50 = vpack.c.bf16 %v965_v47, %v964_v45  ;;  %v2564_v47 = vld [vmem:[%s3458_s7 + $0x20] sm:$0xff] }
 0x175   : > { %1284 = vmatpush.bf16.msra.mxu3 %v2564_v47 }
 0x176   : > { %v778_v52 = vmax.f32 %v733_v49, 0.0  ;;  %1094 = vmatmul.bf16.gmra.mxu2 %v994_v50 }
 0x177   : > { %v895_v53 = vpop.f32.mrf.mxu1 }
 0x178   : > { %v798_v54 = vpack.c.bf16 %v778_v52, %v777_v51  ;;  %v896_v57 = vadd.f32 %v2990_v10, %v895_v53 }
 0x17a   : > { %934 = vmatmul.bf16.gmra.mxu1 %v798_v54  ;;  %v966_v60 = vmax.f32 %v896_v57, 0.0  ;;  %v2563_v54 = vld [vmem:[%s3458_s7 + $0x18] sm:$0xff] }
 0x17b   : > { %v735_v56 = vpop.f32.mrf.mxu0  ;;  %1285 = vmatpush.bf16.msra.mxu3 %v2563_v54 }
 0x17c   : > { %v736_v61 = vadd.f32 %v2929_v44, %v735_v56  ;;  %v2572_v56 = vld [vmem:[%s3460_s9 + $0x20] sm:$0xff] }
 0x17d   : > { %1457 = vmatpush.bf16.msrb.mxu0 %v2572_v56 }
 0x17e   : > { %v779_v2 = vmax.f32 %v736_v61, 0.0 }
 0x17f   : > { %v897_v58 = vpop.f32.mrf.mxu1 }
 0x180   : > { %v898_v59 = vadd.f32 %v2990_v10, %v897_v58 }
 0x182   : > { %v967_v62 = vmax.f32 %v898_v59, 0.0  ;;  %v2561_v59 = vld [vmem:[%s3458_s7 + $0x8] sm:$0xff] }
 0x183   : > { %v737_v63 = vpop.f32.mrf.mxu0 }
 0x184   : > { %v738_v0 = vadd.f32 %v2929_v44, %v737_v63  ;;  %v995_v1 = vpack.c.bf16 %v967_v62, %v966_v60  ;;  %v2560_v63 = vld [vmem:[%s3458_s7] sm:$0xff] }
 0x186   : > { %v780_v3 = vmax.f32 %v738_v0, 0.0  ;;  %1099 = vmatmul.bf16.gmra.mxu2 %v995_v1 }
 0x187   : > { %v900_v4 = vpop.f32.mrf.mxu1 }
 0x188   : > { %v799_v5 = vpack.c.bf16 %v780_v3, %v779_v2  ;;  %v901_v7 = vadd.f32 %v2990_v10, %v900_v4 }
 0x18a   : > { %939 = vmatmul.bf16.gmra.mxu1 %v799_v5  ;;  %v968_v11 = vmax.f32 %v901_v7, 0.0 }
 0x18b   : > { %v740_v6 = vpop.f32.mrf.mxu0 }
 0x18c   : > { %v741_v12 = vadd.f32 %v2929_v44, %v740_v6 }
 0x18e   : > { %v781_v17 = vmax.f32 %v741_v12, 0.0  ;;  %v3066_v12 = vld [vmem:[%s3457_s6] ss:$0 sm:$0xff] }
 0x18f   : > { %v902_v8 = vpop.f32.mrf.mxu1 }
 0x190   : > { %v903_v9 = vadd.f32 %v2990_v10, %v902_v8 }
 0x192   : > { %v969_v13 = vmax.f32 %v903_v9, 0.0 }
 0x193   : > { %v742_v14 = vpop.f32.mrf.mxu0 }
 0x194   : > { %v743_v15 = vadd.f32 %v2929_v44, %v742_v14  ;;  %v996_v16 = vpack.c.bf16 %v969_v13, %v968_v11  ;;  %v2571_v11 = vld [vmem:[%s3460_s9 + $0x18] sm:$0xff] }
 0x195   : > { %1458 = vmatpush.bf16.msrb.mxu0 %v2571_v11 }
 0x196   : > { %v782_v18 = vmax.f32 %v743_v15, 0.0  ;;  %1104 = vmatmul.bf16.gmra.mxu2 %v996_v16 }
 0x197   : > { %v905_v19 = vpop.f32.mrf.mxu1 }
 0x198   : > { %v800_v20 = vpack.c.bf16 %v782_v18, %v781_v17  ;;  %v906_v23 = vadd.f32 %v2990_v10, %v905_v19 }
 0x19a   : > { %944 = vmatmul.bf16.gmra.mxu1 %v800_v20  ;;  %v970_v26 = vmax.f32 %v906_v23, 0.0 }
 0x19b   : > { %v745_v22 = vpop.f32.mrf.mxu0 }
 0x19c   : > { %v746_v27 = vadd.f32 %v2929_v44, %v745_v22 }
 0x19e   : > { %v783_v32 = vmax.f32 %v746_v27, 0.0 }
 0x19f   : > { %v907_v24 = vpop.f32.mrf.mxu1 }
 0x1a0   : > { %v908_v25 = vadd.f32 %v2990_v10, %v907_v24  ;;  %v2583_v24 = vld [vmem:[%s3462_s11 + $0x38] sm:$0xff] }
 0x1a1   : > { %1659 = vmatpush.bf16.msrb.mxu1 %v2583_v24 }
 0x1a2   : > { %v971_v28 = vmax.f32 %v908_v25, 0.0 }
 0x1a3   : > { %v747_v29 = vpop.f32.mrf.mxu0 }
 0x1a4   : > { %v748_v30 = vadd.f32 %v2929_v44, %v747_v29  ;;  %v997_v31 = vpack.c.bf16 %v971_v28, %v970_v26 }
 0x1a6   : > { %v784_v33 = vmax.f32 %v748_v30, 0.0  ;;  %1109 = vmatmul.bf16.gmra.mxu2 %v997_v31 }
 0x1a7   : > { %v910_v34 = vpop.f32.mrf.mxu1 }
 0x1a8   : > { %v801_v36 = vpack.c.bf16 %v784_v33, %v783_v32  ;;  %v911_v39 = vadd.f32 %v2990_v10, %v910_v34 }
 0x1aa   : > { %949 = vmatmul.bf16.gmra.mxu1 %v801_v36  ;;  %v972_v43 = vmax.f32 %v911_v39, 0.0 }
 0x1ab   : > { %v750_v38 = vpop.f32.mrf.mxu0 }
 0x1ac   : > { %v751_v45 = vadd.f32 %v2929_v44, %v750_v38 }
 0x1ae   : > { %v785_v51 = vmax.f32 %v751_v45, 0.0 }
 0x1af   : > { %v912_v40 = vpop.f32.mrf.mxu1 }
 0x1b0   : > { %v913_v42 = vadd.f32 %v2990_v10, %v912_v40 }
 0x1b2   : > { %v973_v46 = vmax.f32 %v913_v42, 0.0  ;;  %v2570_v42 = vld [vmem:[%s3460_s9 + $0x10] sm:$0xff] }
 0x1b3   : > { %v752_v48 = vpop.f32.mrf.mxu0  ;;  %1459 = vmatpush.bf16.msrb.mxu0 %v2570_v42 }
 0x1b4   : > { %v753_v49 = vadd.f32 %v2929_v44, %v752_v48  ;;  %v998_v50 = vpack.c.bf16 %v973_v46, %v972_v43  ;;  %v2562_v44 = vld [vmem:[%s3458_s7 + $0x10] sm:$0xff] }
 0x1b5   : > { %1286 = vmatpush.bf16.msra.mxu3 %v2562_v44 }
 0x1b6   : > { %v786_v52 = vmax.f32 %v753_v49, 0.0  ;;  %1114 = vmatmul.bf16.gmra.mxu2 %v998_v50 }
 0x1b7   : > { %v915_v53 = vpop.f32.mrf.mxu1 }
 0x1b8   : > { %v802_v55 = vpack.c.bf16 %v786_v52, %v785_v51  ;;  %v916_v57 = vadd.f32 %v2990_v10, %v915_v53 }
 0x1b9   : > { %1287 = vmatpush.bf16.msra.mxu3 %v2561_v59 }
 0x1ba   : > { %954 = vmatmul.bf16.gmra.mxu1 %v802_v55  ;;  %v974_v61 = vmax.f32 %v916_v57, 0.0  ;;  %v2582_v55 = vld [vmem:[%s3462_s11 + $0x30] sm:$0xff] }
 0x1bb   : > { %1660 = vmatpush.bf16.msrb.mxu1 %v2582_v55 }
 0x1bd   : > { %1288 = vmatpush.bf16.msra.mxu3 %v2560_v63 }
 0x1bf   : > { %v917_v58 = vpop.f32.mrf.mxu1 }
 0x1c0   : > { %v918_v60 = vadd.f32 %v2990_v10, %v917_v58 }
 0x1c2   : > { %v975_v62 = vmax.f32 %v918_v60, 0.0 }
 0x1c4   : > { %v999_v0 = vpack.c.bf16 %v975_v62, %v974_v61 }
 0x1c6   : > { %1119 = vmatmul.bf16.gmra.mxu2 %v999_v0 }
 0x1c7   : > { %v920_v1 = vpop.f32.mrf.mxu1 }
 0x1c8   : > { %v921_v2 = vadd.f32 %v2990_v10, %v920_v1 }
 0x1ca   : > { %v976_v5 = vmax.f32 %v921_v2, 0.0 }
 0x1cf   : > { %v922_v3 = vpop.f32.mrf.mxu1 }
 0x1d0   : > { %v923_v4 = vadd.f32 %v2990_v10, %v922_v3 }
 0x1d2   : > { %v977_v6 = vmax.f32 %v923_v4, 0.0 }
 0x1d4   : > { %v1000_v7 = vpack.c.bf16 %v977_v6, %v976_v5 }
 0x1d6   : > { %1124 = vmatmul.bf16.gmra.mxu2 %v1000_v7 }
 0x1d7   : > { %v925_v8 = vpop.f32.mrf.mxu1 }
 0x1d8   : > { %v926_v13 = vadd.f32 %v2990_v10, %v925_v8  ;;  %v2569_v8 = vld [vmem:[%s3460_s9 + $0x8] sm:$0xff] }
 0x1d9   : > { %v1085_v9 = vpop.f32.mrf.mxu2  ;;  %1460 = vmatpush.bf16.msrb.mxu0 %v2569_v8  ;;  %v3131_v8 = vld [vmem:[%s3459_s8] ss:$0 sm:$0xff] }
 0x1da   : > { %v1086_v15 = vadd.f32 %v3066_v12, %v1085_v9  ;;  %v978_v18 = vmax.f32 %v926_v13, 0.0 }
 0x1dc   : > { %v1165_v21 = vmax.f32 %v1086_v15, 0.0 }
 0x1df   : > { %v927_v14 = vpop.f32.mrf.mxu1 }
 0x1e0   : > { %v928_v16 = vadd.f32 %v2990_v10, %v927_v14 }
 0x1e1   : > { %v1087_v17 = vpop.f32.mrf.mxu2 }
 0x1e2   : > { %v979_v19 = vmax.f32 %v928_v16, 0.0  ;;  %v1088_v20 = vadd.f32 %v3066_v12, %v1087_v17 }
 0x1e4   : > { %v1166_v22 = vmax.f32 %v1088_v20, 0.0  ;;  %v1001_v23 = vpack.c.bf16 %v979_v19, %v978_v18 }
 0x1e6   : > { %1129 = vmatmul.bf16.gmra.mxu2 %v1001_v23  ;;  %v1197_v25 = vpack.c.bf16 %v1166_v22, %v1165_v21  ;;  %v2581_v22 = vld [vmem:[%s3462_s11 + $0x28] sm:$0xff] }
 0x1e7   : > { %v930_v26 = vpop.f32.mrf.mxu1  ;;  %1661 = vmatpush.bf16.msrb.mxu1 %v2581_v22 }
 0x1e8   : > { %1289 = vmatmul.bf16.vlgmr.msra.gmra.mxu3 %v1197_v25  ;;  %v931_v28 = vadd.f32 %v2990_v10, %v930_v26 }
 0x1e9   : > { %v1090_v27 = vpop.f32.mrf.mxu2 }
 0x1ea   : > { %v1091_v30 = vadd.f32 %v3066_v12, %v1090_v27  ;;  %v980_v33 = vmax.f32 %v931_v28, 0.0 }
 0x1ec   : > { %v1167_v36 = vmax.f32 %v1091_v30, 0.0 }
 0x1ef   : > { %v932_v29 = vpop.f32.mrf.mxu1 }
 0x1f0   : > { %v933_v31 = vadd.f32 %v2990_v10, %v932_v29 }
 0x1f1   : > { %v1092_v32 = vpop.f32.mrf.mxu2 }
 0x1f2   : > { %v981_v34 = vmax.f32 %v933_v31, 0.0  ;;  %v1093_v35 = vadd.f32 %v3066_v12, %v1092_v32 }
 0x1f4   : > { %v1168_v37 = vmax.f32 %v1093_v35, 0.0  ;;  %v1002_v38 = vpack.c.bf16 %v981_v34, %v980_v33 }
 0x1f6   : > { %1134 = vmatmul.bf16.gmra.mxu2 %v1002_v38  ;;  %v1198_v39 = vpack.c.bf16 %v1168_v37, %v1167_v36 }
 0x1f7   : > { %v935_v40 = vpop.f32.mrf.mxu1 }
 0x1f8   : > { %1294 = vmatmul.bf16.gmra.mxu3 %v1198_v39  ;;  %v936_v43 = vadd.f32 %v2990_v10, %v935_v40  ;;  %v2568_v39 = vld [vmem:[%s3460_s9] sm:$0xff] }
 0x1f9   : > { %v1095_v41 = vpop.f32.mrf.mxu2  ;;  %1461 = vmatpush.bf16.msrb.mxu0 %v2568_v39 }
 0x1fa   : > { %v1096_v46 = vadd.f32 %v3066_v12, %v1095_v41  ;;  %v982_v49 = vmax.f32 %v936_v43, 0.0 }
 0x1fc   : > { %v1169_v52 = vmax.f32 %v1096_v46, 0.0 }
 0x1ff   : > { %v937_v45 = vpop.f32.mrf.mxu1 }
 0x200   : > { %v938_v47 = vadd.f32 %v2990_v10, %v937_v45 }
 0x201   : > { %v1097_v48 = vpop.f32.mrf.mxu2 }
 0x202   : > { %v983_v50 = vmax.f32 %v938_v47, 0.0  ;;  %v1098_v51 = vadd.f32 %v3066_v12, %v1097_v48 }
 0x204   : > { %v1170_v53 = vmax.f32 %v1098_v51, 0.0  ;;  %v1003_v54 = vpack.c.bf16 %v983_v50, %v982_v49 }
 0x206   : > { %1139 = vmatmul.bf16.gmra.mxu2 %v1003_v54  ;;  %v1199_v56 = vpack.c.bf16 %v1170_v53, %v1169_v52  ;;  %v2580_v53 = vld [vmem:[%s3462_s11 + $0x20] sm:$0xff] }
 0x207   : > { %v940_v44 = vpop.f32.mrf.mxu1  ;;  %1662 = vmatpush.bf16.msrb.mxu1 %v2580_v53 }
 0x208   : > { %1299 = vmatmul.bf16.gmra.mxu3 %v1199_v56  ;;  %v941_v58 = vadd.f32 %v2990_v10, %v940_v44 }
 0x209   : > { %v1100_v57 = vpop.f32.mrf.mxu2 }
 0x20a   : > { %v1101_v60 = vadd.f32 %v3066_v12, %v1100_v57  ;;  %v984_v63 = vmax.f32 %v941_v58, 0.0 }
 0x20c   : > { %v1171_v2 = vmax.f32 %v1101_v60, 0.0 }
 0x20f   : > { %v942_v59 = vpop.f32.mrf.mxu1 }
 0x210   : > { %v943_v61 = vadd.f32 %v2990_v10, %v942_v59 }
 0x211   : > { %v1102_v62 = vpop.f32.mrf.mxu2 }
 0x212   : > { %v985_v0 = vmax.f32 %v943_v61, 0.0  ;;  %v1103_v1 = vadd.f32 %v3066_v12, %v1102_v62 }
 0x214   : > { %v1172_v3 = vmax.f32 %v1103_v1, 0.0  ;;  %v1004_v4 = vpack.c.bf16 %v985_v0, %v984_v63 }
 0x216   : > { %1144 = vmatmul.bf16.gmra.mxu2 %v1004_v4  ;;  %v1200_v5 = vpack.c.bf16 %v1172_v3, %v1171_v2  ;;  %v2579_v3 = vld [vmem:[%s3462_s11 + $0x18] sm:$0xff] }
 0x217   : > { %v945_v6 = vpop.f32.mrf.mxu1  ;;  %1663 = vmatpush.bf16.msrb.mxu1 %v2579_v3 }
 0x218   : > { %1304 = vmatmul.bf16.gmra.mxu3 %v1200_v5  ;;  %v946_v9 = vadd.f32 %v2990_v10, %v945_v6  ;;  %v2591_v6 = vld [vmem:[%s3464_s13 + $0x38] sm:$0xff] }
 0x219   : > { %v1105_v7 = vpop.f32.mrf.mxu2  ;;  %1864 = vmatpush.bf16.msrb.mxu2 %v2591_v6 }
 0x21a   : > { %v1106_v13 = vadd.f32 %v3066_v12, %v1105_v7  ;;  %v986_v16 = vmax.f32 %v946_v9, 0.0 }
 0x21c   : > { %v1173_v19 = vmax.f32 %v1106_v13, 0.0 }
 0x21f   : > { %v947_v11 = vpop.f32.mrf.mxu1 }
 0x220   : > { %v948_v14 = vadd.f32 %v2990_v10, %v947_v11 }
 0x221   : > { %v1107_v15 = vpop.f32.mrf.mxu2 }
 0x222   : > { %v987_v17 = vmax.f32 %v948_v14, 0.0  ;;  %v1108_v18 = vadd.f32 %v3066_v12, %v1107_v15 }
 0x224   : > { %v1174_v20 = vmax.f32 %v1108_v18, 0.0  ;;  %v1005_v21 = vpack.c.bf16 %v987_v17, %v986_v16 }
 0x226   : > { %1149 = vmatmul.bf16.gmra.mxu2 %v1005_v21  ;;  %v1201_v23 = vpack.c.bf16 %v1174_v20, %v1173_v19 }
 0x227   : > { %v950_v24 = vpop.f32.mrf.mxu1 }
 0x228   : > { %1309 = vmatmul.bf16.gmra.mxu3 %v1201_v23  ;;  %v951_v26 = vadd.f32 %v2990_v10, %v950_v24 }
 0x229   : > { %v1110_v25 = vpop.f32.mrf.mxu2 }
 0x22a   : > { %v1111_v28 = vadd.f32 %v3066_v12, %v1110_v25  ;;  %v988_v31 = vmax.f32 %v951_v26, 0.0 }
 0x22c   : > { %v1175_v34 = vmax.f32 %v1111_v28, 0.0 }
 0x22f   : > { %v952_v27 = vpop.f32.mrf.mxu1 }
 0x230   : > { %v953_v29 = vadd.f32 %v2990_v10, %v952_v27 }
 0x231   : > { %v1112_v30 = vpop.f32.mrf.mxu2 }
 0x232   : > { %v989_v32 = vmax.f32 %v953_v29, 0.0  ;;  %v1113_v33 = vadd.f32 %v3066_v12, %v1112_v30 }
 0x234   : > { %v1176_v35 = vmax.f32 %v1113_v33, 0.0  ;;  %v1006_v36 = vpack.c.bf16 %v989_v32, %v988_v31  ;;  %v2578_v32 = vld [vmem:[%s3462_s11 + $0x10] sm:$0xff] }
 0x235   : > { %1664 = vmatpush.bf16.msrb.mxu1 %v2578_v32 }
 0x236   : > { %1154 = vmatmul.bf16.gmra.mxu2 %v1006_v36  ;;  %v1202_v37 = vpack.c.bf16 %v1176_v35, %v1175_v34  ;;  %v2590_v35 = vld [vmem:[%s3464_s13 + $0x30] sm:$0xff] }
 0x237   : > { %v955_v38 = vpop.f32.mrf.mxu1  ;;  %1865 = vmatpush.bf16.msrb.mxu2 %v2590_v35 }
 0x238   : > { %1314 = vmatmul.bf16.gmra.mxu3 %v1202_v37  ;;  %v956_v41 = vadd.f32 %v2990_v10, %v955_v38 }
 0x239   : > { %v1115_v40 = vpop.f32.mrf.mxu2 }
 0x23a   : > { %v1116_v43 = vadd.f32 %v3066_v12, %v1115_v40  ;;  %v990_v47 = vmax.f32 %v956_v41, 0.0 }
 0x23c   : > { %v1177_v50 = vmax.f32 %v1116_v43, 0.0 }
 0x23f   : > { %v957_v42 = vpop.f32.mrf.mxu1 }
 0x240   : > { %v958_v45 = vadd.f32 %v2990_v10, %v957_v42 }
 0x241   : > { %v1117_v46 = vpop.f32.mrf.mxu2 }
 0x242   : > { %v991_v48 = vmax.f32 %v958_v45, 0.0  ;;  %v1118_v49 = vadd.f32 %v3066_v12, %v1117_v46 }
 0x244   : > { %v1178_v51 = vmax.f32 %v1118_v49, 0.0  ;;  %v1007_v52 = vpack.c.bf16 %v991_v48, %v990_v47 }
 0x246   : > { %1159 = vmatmul.bf16.gmra.mxu2 %v1007_v52  ;;  %v1203_v54 = vpack.c.bf16 %v1178_v51, %v1177_v50 }
 0x248   : > { %1319 = vmatmul.bf16.gmra.mxu3 %v1203_v54 }
 0x249   : > { %v1120_v55 = vpop.f32.mrf.mxu2 }
 0x24a   : > { %v1121_v56 = vadd.f32 %v3066_v12, %v1120_v55 }
 0x24c   : > { %v1179_v57 = vmax.f32 %v1121_v56, 0.0 }
 0x251   : > { %v1122_v10 = vpop.f32.mrf.mxu2 }
 0x252   : > { %v1123_v44 = vadd.f32 %v3066_v12, %v1122_v10 }
 0x254   : > { %v1180_v58 = vmax.f32 %v1123_v44, 0.0 }
 0x256   : > { %v1204_v59 = vpack.c.bf16 %v1180_v58, %v1179_v57  ;;  %v2577_v57 = vld [vmem:[%s3462_s11 + $0x8] sm:$0xff] }
 0x257   : > { %1665 = vmatpush.bf16.msrb.mxu1 %v2577_v57 }
 0x258   : > { %1324 = vmatmul.bf16.gmra.mxu3 %v1204_v59 }
 0x259   : > { %v1125_v60 = vpop.f32.mrf.mxu2 }
 0x25a   : > { %v1126_v61 = vadd.f32 %v3066_v12, %v1125_v60  ;;  %v2589_v60 = vld [vmem:[%s3464_s13 + $0x28] sm:$0xff] }
 0x25b   : > { %1866 = vmatpush.bf16.msrb.mxu2 %v2589_v60 }
 0x25c   : > { %v1181_v0 = vmax.f32 %v1126_v61, 0.0 }
 0x261   : > { %v1127_v62 = vpop.f32.mrf.mxu2 }
 0x262   : > { %v1128_v63 = vadd.f32 %v3066_v12, %v1127_v62 }
 0x264   : > { %v1182_v1 = vmax.f32 %v1128_v63, 0.0 }
 0x266   : > { %v1205_v2 = vpack.c.bf16 %v1182_v1, %v1181_v0 }
 0x268   : > { %1329 = vmatmul.bf16.gmra.mxu3 %v1205_v2 }
 0x269   : > { %v1130_v4 = vpop.f32.mrf.mxu2 }
 0x26a   : > { %v1131_v7 = vadd.f32 %v3066_v12, %v1130_v4 }
 0x26b   : > { %v1290_v5 = vpop.f32.mrf.mxu3 }
 0x26c   : > { %v1183_v14 = vmax.f32 %v1131_v7, 0.0  ;;  %v1291_v15 = vadd.f32 %v3131_v8, %v1290_v5 }
 0x271   : > { %v1132_v9 = vpop.f32.mrf.mxu2 }
 0x272   : > { %v1133_v11 = vadd.f32 %v3066_v12, %v1132_v9 }
 0x273   : > { %v1292_v13 = vpop.f32.mrf.mxu3 }
 0x274   : > { %v1184_v16 = vmax.f32 %v1133_v11, 0.0  ;;  %v1293_v17 = vadd.f32 %v3131_v8, %v1292_v13 }
 0x276   : > { %v1370_v18 = vpack.c.bf16 %v1293_v17, %v1291_v15  ;;  %v1206_v19 = vpack.c.bf16 %v1184_v16, %v1183_v14 }
 0x278   : > { %1334 = vmatmul.bf16.gmra.mxu3 %v1206_v19  ;;  %1462 = vmatmul.bf16.vlgmr.msrb.gmra.mxu0 %v1370_v18 }
 0x279   : > { %v1135_v20 = vpop.f32.mrf.mxu2 }
 0x27a   : > { %v1136_v22 = vadd.f32 %v3066_v12, %v1135_v20 }
 0x27b   : > { %v1295_v21 = vpop.f32.mrf.mxu3 }
 0x27c   : > { %v1185_v26 = vmax.f32 %v1136_v22, 0.0  ;;  %v1296_v27 = vadd.f32 %v3131_v8, %v1295_v21  ;;  %v2576_v22 = vld [vmem:[%s3462_s11] sm:$0xff] }
 0x27d   : > { %1666 = vmatpush.bf16.msrb.mxu1 %v2576_v22 }
 0x281   : > { %v1137_v23 = vpop.f32.mrf.mxu2 }
 0x282   : > { %v1138_v24 = vadd.f32 %v3066_v12, %v1137_v23 }
 0x283   : > { %v1297_v25 = vpop.f32.mrf.mxu3 }
 0x284   : > { %v1186_v28 = vmax.f32 %v1138_v24, 0.0  ;;  %v1298_v29 = vadd.f32 %v3131_v8, %v1297_v25  ;;  %v2588_v25 = vld [vmem:[%s3464_s13 + $0x20] sm:$0xff] }
 0x285   : > { %1867 = vmatpush.bf16.msrb.mxu2 %v2588_v25 }
 0x286   : > { %v1371_v30 = vpack.c.bf16 %v1298_v29, %v1296_v27  ;;  %v1207_v31 = vpack.c.bf16 %v1186_v28, %v1185_v26 }
 0x288   : > { %1339 = vmatmul.bf16.gmra.mxu3 %v1207_v31  ;;  %1467 = vmatmul.bf16.gmra.mxu0 %v1371_v30 }
 0x289   : > { %v1140_v33 = vpop.f32.mrf.mxu2 }
 0x28a   : > { %v1141_v36 = vadd.f32 %v3066_v12, %v1140_v33 }
 0x28b   : > { %v1300_v34 = vpop.f32.mrf.mxu3 }
 0x28c   : > { %v1187_v40 = vmax.f32 %v1141_v36, 0.0  ;;  %v1301_v41 = vadd.f32 %v3131_v8, %v1300_v34 }
 0x291   : > { %v1142_v37 = vpop.f32.mrf.mxu2 }
 0x292   : > { %v1143_v38 = vadd.f32 %v3066_v12, %v1142_v37 }
 0x293   : > { %v1302_v39 = vpop.f32.mrf.mxu3 }
 0x294   : > { %v1188_v42 = vmax.f32 %v1143_v38, 0.0  ;;  %v1303_v43 = vadd.f32 %v3131_v8, %v1302_v39 }
 0x296   : > { %v1372_v45 = vpack.c.bf16 %v1303_v43, %v1301_v41  ;;  %v1208_v46 = vpack.c.bf16 %v1188_v42, %v1187_v40  ;;  %v2587_v41 = vld [vmem:[%s3464_s13 + $0x18] sm:$0xff] }
 0x297   : > { %1868 = vmatpush.bf16.msrb.mxu2 %v2587_v41 }
 0x298   : > { %1344 = vmatmul.bf16.gmra.mxu3 %v1208_v46  ;;  %1472 = vmatmul.bf16.gmra.mxu0 %v1372_v45 }
 0x299   : > { %v1145_v47 = vpop.f32.mrf.mxu2 }
 0x29a   : > { %v1146_v49 = vadd.f32 %v3066_v12, %v1145_v47 }
 0x29b   : > { %v1305_v48 = vpop.f32.mrf.mxu3 }
 0x29c   : > { %v1189_v53 = vmax.f32 %v1146_v49, 0.0  ;;  %v1306_v54 = vadd.f32 %v3131_v8, %v1305_v48  ;;  %v3188_v48 = vld [vmem:[%s3461_s10] ss:$0 sm:$0xff] }
 0x2a1   : > { %v1147_v50 = vpop.f32.mrf.mxu2 }
 0x2a2   : > { %v1148_v51 = vadd.f32 %v3066_v12, %v1147_v50 }
 0x2a3   : > { %v1307_v52 = vpop.f32.mrf.mxu3 }
 0x2a4   : > { %v1190_v55 = vmax.f32 %v1148_v51, 0.0  ;;  %v1308_v56 = vadd.f32 %v3131_v8, %v1307_v52 }
 0x2a6   : > { %v1373_v10 = vpack.c.bf16 %v1308_v56, %v1306_v54  ;;  %v1209_v44 = vpack.c.bf16 %v1190_v55, %v1189_v53  ;;  %v2599_v55 = vld [vmem:[%s3466_s15 + $0x38] sm:$0xff] }
 0x2a7   : > { %2069 = vmatpush.bf16.msrb.mxu3 %v2599_v55 }
 0x2a8   : > { %1349 = vmatmul.bf16.gmra.mxu3 %v1209_v44  ;;  %1477 = vmatmul.bf16.gmra.mxu0 %v1373_v10 }
 0x2a9   : > { %v1150_v58 = vpop.f32.mrf.mxu2 }
 0x2aa   : > { %v1151_v61 = vadd.f32 %v3066_v12, %v1150_v58 }
 0x2ab   : > { %v1310_v59 = vpop.f32.mrf.mxu3 }
 0x2ac   : > { %v1191_v1 = vmax.f32 %v1151_v61, 0.0  ;;  %v1311_v2 = vadd.f32 %v3131_v8, %v1310_v59 }
 0x2b1   : > { %v1152_v62 = vpop.f32.mrf.mxu2 }
 0x2b2   : > { %v1153_v63 = vadd.f32 %v3066_v12, %v1152_v62 }
 0x2b3   : > { %v1312_v0 = vpop.f32.mrf.mxu3 }
 0x2b4   : > { %v1192_v3 = vmax.f32 %v1153_v63, 0.0  ;;  %v1313_v4 = vadd.f32 %v3131_v8, %v1312_v0 }
 0x2b6   : > { %v1374_v5 = vpack.c.bf16 %v1313_v4, %v1311_v2  ;;  %v1210_v6 = vpack.c.bf16 %v1192_v3, %v1191_v1  ;;  %v2586_v2 = vld [vmem:[%s3464_s13 + $0x10] sm:$0xff] }
 0x2b7   : > { %1869 = vmatpush.bf16.msrb.mxu2 %v2586_v2 }
 0x2b8   : > { %1354 = vmatmul.bf16.gmra.mxu3 %v1210_v6  ;;  %1482 = vmatmul.bf16.gmra.mxu0 %v1374_v5 }
 0x2b9   : > { %v1155_v7 = vpop.f32.mrf.mxu2 }
 0x2ba   : > { %v1156_v11 = vadd.f32 %v3066_v12, %v1155_v7 }
 0x2bb   : > { %v1315_v9 = vpop.f32.mrf.mxu3 }
 0x2bc   : > { %v1193_v16 = vmax.f32 %v1156_v11, 0.0  ;;  %v1316_v17 = vadd.f32 %v3131_v8, %v1315_v9 }
 0x2c1   : > { %v1157_v13 = vpop.f32.mrf.mxu2 }
 0x2c2   : > { %v1158_v14 = vadd.f32 %v3066_v12, %v1157_v13 }
 0x2c3   : > { %v1317_v15 = vpop.f32.mrf.mxu3 }
 0x2c4   : > { %v1194_v18 = vmax.f32 %v1158_v14, 0.0  ;;  %v1318_v19 = vadd.f32 %v3131_v8, %v1317_v15 }
 0x2c6   : > { %v1375_v20 = vpack.c.bf16 %v1318_v19, %v1316_v17  ;;  %v1211_v21 = vpack.c.bf16 %v1194_v18, %v1193_v16  ;;  %v2598_v19 = vld [vmem:[%s3466_s15 + $0x30] sm:$0xff] }
 0x2c7   : > { %2070 = vmatpush.bf16.msrb.mxu3 %v2598_v19 }
 0x2c8   : > { %1359 = vmatmul.bf16.gmra.mxu3 %v1211_v21  ;;  %1487 = vmatmul.bf16.gmra.mxu0 %v1375_v20 }
 0x2c9   : > { %v1160_v23 = vpop.f32.mrf.mxu2 }
 0x2ca   : > { %v1161_v26 = vadd.f32 %v3066_v12, %v1160_v23 }
 0x2cb   : > { %v1320_v24 = vpop.f32.mrf.mxu3 }
 0x2cc   : > { %v1195_v30 = vmax.f32 %v1161_v26, 0.0  ;;  %v1321_v31 = vadd.f32 %v3131_v8, %v1320_v24 }
 0x2d1   : > { %v1162_v27 = vpop.f32.mrf.mxu2 }
 0x2d2   : > { %v1163_v28 = vadd.f32 %v3066_v12, %v1162_v27 }
 0x2d3   : > { %v1322_v29 = vpop.f32.mrf.mxu3 }
 0x2d4   : > { %v1196_v32 = vmax.f32 %v1163_v28, 0.0  ;;  %v1323_v33 = vadd.f32 %v3131_v8, %v1322_v29 }
 0x2d6   : > { %v1376_v34 = vpack.c.bf16 %v1323_v33, %v1321_v31  ;;  %v1212_v35 = vpack.c.bf16 %v1196_v32, %v1195_v30  ;;  %v2585_v32 = vld [vmem:[%s3464_s13 + $0x8] sm:$0xff] }
 0x2d7   : > { %1870 = vmatpush.bf16.msrb.mxu2 %v2585_v32 }
 0x2d8   : > { %1364 = vmatmul.bf16.gmra.mxu3 %v1212_v35  ;;  %1492 = vmatmul.bf16.gmra.mxu0 %v1376_v34 }
 0x2db   : > { %v1325_v36 = vpop.f32.mrf.mxu3 }
 0x2dc   : > { %v1326_v38 = vadd.f32 %v3131_v8, %v1325_v36 }
 0x2e3   : > { %v1327_v37 = vpop.f32.mrf.mxu3 }
 0x2e4   : > { %v1328_v39 = vadd.f32 %v3131_v8, %v1327_v37 }
 0x2e6   : > { %v1377_v40 = vpack.c.bf16 %v1328_v39, %v1326_v38 }
 0x2e8   : > { %1497 = vmatmul.bf16.gmra.mxu0 %v1377_v40 }
 0x2eb   : > { %v1330_v12 = vpop.f32.mrf.mxu3 }
 0x2ec   : > { %v1331_v43 = vadd.f32 %v3131_v8, %v1330_v12 }
 0x2f3   : > { %v1332_v42 = vpop.f32.mrf.mxu3 }
 0x2f4   : > { %v1333_v45 = vadd.f32 %v3131_v8, %v1332_v42 }
 0x2f5   : > { %v1463_v46 = vpop.f32.mrf.mxu0 }
 0x2f6   : > { %v1378_v47 = vpack.c.bf16 %v1333_v45, %v1331_v43  ;;  %v1464_v50 = vadd.f32 %v3188_v48, %v1463_v46  ;;  %v2597_v45 = vld [vmem:[%s3466_s15 + $0x28] sm:$0xff] }
 0x2f7   : > { %2071 = vmatpush.bf16.msrb.mxu3 %v2597_v45 }
 0x2f8   : > { %1502 = vmatmul.bf16.gmra.mxu0 %v1378_v47  ;;  %v1543_v53 = vmax.f32 %v1464_v50, 0.0 }
 0x2fb   : > { %v1335_v49 = vpop.f32.mrf.mxu3 }
 0x2fc   : > { %v1336_v44 = vadd.f32 %v3131_v8, %v1335_v49 }
 0x2fd   : > { %v1465_v51 = vpop.f32.mrf.mxu0 }
 0x2fe   : > { %v1466_v52 = vadd.f32 %v3188_v48, %v1465_v51 }
 0x300   : > { %v1544_v54 = vmax.f32 %v1466_v52, 0.0 }
 0x302   : > { %v1575_v56 = vpack.c.bf16 %v1544_v54, %v1543_v53 }
 0x303   : > { %v1337_v10 = vpop.f32.mrf.mxu3 }
 0x304   : > { %v1338_v57 = vadd.f32 %v3131_v8, %v1337_v10  ;;  %1667 = vmatmul.bf16.vlgmr.msrb.gmra.mxu1 %v1575_v56 }
 0x305   : > { %v1468_v58 = vpop.f32.mrf.mxu0 }
 0x306   : > { %v1379_v59 = vpack.c.bf16 %v1338_v57, %v1336_v44  ;;  %v1469_v61 = vadd.f32 %v3188_v48, %v1468_v58  ;;  %v2584_v57 = vld [vmem:[%s3464_s13] sm:$0xff] }
 0x307   : > { %1871 = vmatpush.bf16.msrb.mxu2 %v2584_v57  ;;  %v2594_v57 = vld [vmem:[%s3466_s15 + $0x10] sm:$0xff] }
 0x308   : > { %1507 = vmatmul.bf16.gmra.mxu0 %v1379_v59  ;;  %v1545_v0 = vmax.f32 %v1469_v61, 0.0 }
 0x30b   : > { %v1340_v60 = vpop.f32.mrf.mxu3 }
 0x30c   : > { %v1341_v5 = vadd.f32 %v3131_v8, %v1340_v60 }
 0x30d   : > { %v1470_v62 = vpop.f32.mrf.mxu0 }
 0x30e   : > { %v1471_v63 = vadd.f32 %v3188_v48, %v1470_v62 }
 0x310   : > { %v1546_v1 = vmax.f32 %v1471_v63, 0.0 }
 0x312   : > { %v1576_v3 = vpack.c.bf16 %v1546_v1, %v1545_v0 }
 0x313   : > { %v1342_v4 = vpop.f32.mrf.mxu3 }
 0x314   : > { %v1343_v6 = vadd.f32 %v3131_v8, %v1342_v4  ;;  %1672 = vmatmul.bf16.gmra.mxu1 %v1576_v3 }
 0x315   : > { %v1473_v7 = vpop.f32.mrf.mxu0 }
 0x316   : > { %v1380_v9 = vpack.c.bf16 %v1343_v6, %v1341_v5  ;;  %v1474_v13 = vadd.f32 %v3188_v48, %v1473_v7 }
 0x318   : > { %1512 = vmatmul.bf16.gmra.mxu0 %v1380_v9  ;;  %v1547_v16 = vmax.f32 %v1474_v13, 0.0 }
 0x31b   : > { %v1345_v11 = vpop.f32.mrf.mxu3 }
 0x31c   : > { %v1346_v21 = vadd.f32 %v3131_v8, %v1345_v11  ;;  %v2596_v11 = vld [vmem:[%s3466_s15 + $0x20] sm:$0xff] }
 0x31d   : > { %v1475_v14 = vpop.f32.mrf.mxu0  ;;  %2072 = vmatpush.bf16.msrb.mxu3 %v2596_v11 }
 0x31e   : > { %v1476_v15 = vadd.f32 %v3188_v48, %v1475_v14 }
 0x320   : > { %v1548_v17 = vmax.f32 %v1476_v15, 0.0 }
 0x322   : > { %v1577_v18 = vpack.c.bf16 %v1548_v17, %v1547_v16 }
 0x323   : > { %v1347_v20 = vpop.f32.mrf.mxu3 }
 0x324   : > { %v1348_v22 = vadd.f32 %v3131_v8, %v1347_v20  ;;  %1677 = vmatmul.bf16.gmra.mxu1 %v1577_v18 }
 0x325   : > { %v1478_v23 = vpop.f32.mrf.mxu0 }
 0x326   : > { %v1381_v24 = vpack.c.bf16 %v1348_v22, %v1346_v21  ;;  %v1479_v26 = vadd.f32 %v3188_v48, %v1478_v23 }
 0x328   : > { %1517 = vmatmul.bf16.gmra.mxu0 %v1381_v24  ;;  %v1549_v29 = vmax.f32 %v1479_v26, 0.0 }
 0x32b   : > { %v1350_v25 = vpop.f32.mrf.mxu3 }
 0x32c   : > { %v1351_v34 = vadd.f32 %v3131_v8, %v1350_v25 }
 0x32d   : > { %v1480_v27 = vpop.f32.mrf.mxu0 }
 0x32e   : > { %v1481_v28 = vadd.f32 %v3188_v48, %v1480_v27 }
 0x330   : > { %v1550_v30 = vmax.f32 %v1481_v28, 0.0  ;;  %v3246_v28 = vld [vmem:[%s3463_s12] ss:$0 sm:$0xff] }
 0x332   : > { %v1578_v31 = vpack.c.bf16 %v1550_v30, %v1549_v29  ;;  %v2595_v29 = vld [vmem:[%s3466_s15 + $0x18] sm:$0xff] }
 0x333   : > { %v1352_v33 = vpop.f32.mrf.mxu3  ;;  %2073 = vmatpush.bf16.msrb.mxu3 %v2595_v29 }
 0x334   : > { %v1353_v35 = vadd.f32 %v3131_v8, %v1352_v33  ;;  %1682 = vmatmul.bf16.gmra.mxu1 %v1578_v31 }
 0x335   : > { %v1483_v36 = vpop.f32.mrf.mxu0 }
 0x336   : > { %v1382_v37 = vpack.c.bf16 %v1353_v35, %v1351_v34  ;;  %v1484_v39 = vadd.f32 %v3188_v48, %v1483_v36 }
 0x337   : > { %2074 = vmatpush.bf16.msrb.mxu3 %v2594_v57 }
 0x338   : > { %1522 = vmatmul.bf16.gmra.mxu0 %v1382_v37  ;;  %v1551_v41 = vmax.f32 %v1484_v39, 0.0 }
 0x33b   : > { %v1355_v38 = vpop.f32.mrf.mxu3 }
 0x33c   : > { %v1356_v47 = vadd.f32 %v3131_v8, %v1355_v38 }
 0x33d   : > { %v1485_v40 = vpop.f32.mrf.mxu0 }
 0x33e   : > { %v1486_v12 = vadd.f32 %v3188_v48, %v1485_v40 }
 0x340   : > { %v1552_v42 = vmax.f32 %v1486_v12, 0.0 }
 0x342   : > { %v1579_v43 = vpack.c.bf16 %v1552_v42, %v1551_v41 }
 0x343   : > { %v1357_v46 = vpop.f32.mrf.mxu3 }
 0x344   : > { %v1358_v49 = vadd.f32 %v3131_v8, %v1357_v46  ;;  %1687 = vmatmul.bf16.gmra.mxu1 %v1579_v43 }
 0x345   : > { %v1488_v50 = vpop.f32.mrf.mxu0 }
 0x346   : > { %v1383_v51 = vpack.c.bf16 %v1358_v49, %v1356_v47  ;;  %v1489_v53 = vadd.f32 %v3188_v48, %v1488_v50 }
 0x348   : > { %1527 = vmatmul.bf16.gmra.mxu0 %v1383_v51  ;;  %v1553_v56 = vmax.f32 %v1489_v53, 0.0 }
 0x34b   : > { %v1360_v52 = vpop.f32.mrf.mxu3 }
 0x34c   : > { %v1361_v59 = vadd.f32 %v3131_v8, %v1360_v52 }
 0x34d   : > { %v1490_v54 = vpop.f32.mrf.mxu0 }
 0x34e   : > { %v1491_v55 = vadd.f32 %v3188_v48, %v1490_v54 }
 0x350   : > { %v1554_v10 = vmax.f32 %v1491_v55, 0.0 }
 0x352   : > { %v1580_v44 = vpack.c.bf16 %v1554_v10, %v1553_v56 }
 0x353   : > { %v1362_v58 = vpop.f32.mrf.mxu3 }
 0x354   : > { %v1363_v60 = vadd.f32 %v3131_v8, %v1362_v58  ;;  %1692 = vmatmul.bf16.gmra.mxu1 %v1580_v44 }
 0x355   : > { %v1493_v61 = vpop.f32.mrf.mxu0 }
 0x356   : > { %v1384_v62 = vpack.c.bf16 %v1363_v60, %v1361_v59  ;;  %v1494_v0 = vadd.f32 %v3188_v48, %v1493_v61 }
 0x358   : > { %1532 = vmatmul.bf16.gmra.mxu0 %v1384_v62  ;;  %v1555_v3 = vmax.f32 %v1494_v0, 0.0 }
 0x35b   : > { %v1365_v63 = vpop.f32.mrf.mxu3 }
 0x35c   : > { %v1366_v7 = vadd.f32 %v3131_v8, %v1365_v63 }
 0x35d   : > { %v1495_v1 = vpop.f32.mrf.mxu0 }
 0x35e   : > { %v1496_v2 = vadd.f32 %v3188_v48, %v1495_v1 }
 0x360   : > { %v1556_v4 = vmax.f32 %v1496_v2, 0.0 }
 0x362   : > { %v1581_v5 = vpack.c.bf16 %v1556_v4, %v1555_v3 }
 0x363   : > { %v1367_v6 = vpop.f32.mrf.mxu3 }
 0x364   : > { %v1368_v9 = vadd.f32 %v3131_v8, %v1367_v6  ;;  %1697 = vmatmul.bf16.gmra.mxu1 %v1581_v5 }
 0x365   : > { %v1498_v13 = vpop.f32.mrf.mxu0 }
 0x366   : > { %v1385_v14 = vpack.c.bf16 %v1368_v9, %v1366_v7  ;;  %v1499_v15 = vadd.f32 %v3188_v48, %v1498_v13 }
 0x368   : > { %1537 = vmatmul.bf16.gmra.mxu0 %v1385_v14  ;;  %v1557_v18 = vmax.f32 %v1499_v15, 0.0 }
 0x36d   : > { %v1500_v16 = vpop.f32.mrf.mxu0 }
 0x36e   : > { %v1501_v17 = vadd.f32 %v3188_v48, %v1500_v16 }
 0x370   : > { %v1558_v19 = vmax.f32 %v1501_v17, 0.0 }
 0x372   : > { %v1582_v20 = vpack.c.bf16 %v1558_v19, %v1557_v18 }
 0x374   : > { %1702 = vmatmul.bf16.gmra.mxu1 %v1582_v20 }
 0x375   : > { %v1503_v21 = vpop.f32.mrf.mxu0 }
 0x376   : > { %v1504_v8 = vadd.f32 %v3188_v48, %v1503_v21 }
 0x378   : > { %v1559_v24 = vmax.f32 %v1504_v8, 0.0 }
 0x37d   : > { %v1505_v22 = vpop.f32.mrf.mxu0 }
 0x37e   : > { %v1506_v23 = vadd.f32 %v3188_v48, %v1505_v22 }
 0x380   : > { %v1560_v25 = vmax.f32 %v1506_v23, 0.0 }
 0x381   : > { %v1668_v26 = vpop.f32.mrf.mxu1 }
 0x382   : > { %v1583_v27 = vpack.c.bf16 %v1560_v25, %v1559_v24  ;;  %v1669_v31 = vadd.f32 %v3246_v28, %v1668_v26  ;;  %v2593_v24 = vld [vmem:[%s3466_s15 + $0x8] sm:$0xff] }
 0x383   : > { %2075 = vmatpush.bf16.msrb.mxu3 %v2593_v24 }
 0x384   : > { %1707 = vmatmul.bf16.gmra.mxu1 %v1583_v27  ;;  %v1748_v34 = vmax.f32 %v1669_v31, 0.0 }
 0x385   : > { %v1508_v30 = vpop.f32.mrf.mxu0 }
 0x386   : > { %v1509_v35 = vadd.f32 %v3188_v48, %v1508_v30 }
 0x388   : > { %v1561_v40 = vmax.f32 %v1509_v35, 0.0 }
 0x389   : > { %v1670_v32 = vpop.f32.mrf.mxu1 }
 0x38a   : > { %v1671_v33 = vadd.f32 %v3246_v28, %v1670_v32 }
 0x38c   : > { %v1749_v36 = vmax.f32 %v1671_v33, 0.0 }
 0x38d   : > { %v1510_v37 = vpop.f32.mrf.mxu0 }
 0x38e   : > { %v1780_v38 = vpack.c.bf16 %v1749_v36, %v1748_v34  ;;  %v1511_v39 = vadd.f32 %v3188_v48, %v1510_v37 }
 0x390   : > { %v1562_v12 = vmax.f32 %v1511_v39, 0.0  ;;  %1872 = vmatmul.bf16.vlgmr.msrb.gmra.mxu2 %v1780_v38 }
 0x391   : > { %v1673_v41 = vpop.f32.mrf.mxu1 }
 0x392   : > { %v1584_v42 = vpack.c.bf16 %v1562_v12, %v1561_v40  ;;  %v1674_v45 = vadd.f32 %v3246_v28, %v1673_v41 }
 0x394   : > { %1712 = vmatmul.bf16.gmra.mxu1 %v1584_v42  ;;  %v1750_v49 = vmax.f32 %v1674_v45, 0.0 }
 0x395   : > { %v1513_v43 = vpop.f32.mrf.mxu0 }
 0x396   : > { %v1514_v50 = vadd.f32 %v3188_v48, %v1513_v43 }
 0x398   : > { %v1563_v55 = vmax.f32 %v1514_v50, 0.0 }
 0x399   : > { %v1675_v46 = vpop.f32.mrf.mxu1 }
 0x39a   : > { %v1676_v47 = vadd.f32 %v3246_v28, %v1675_v46 }
 0x39c   : > { %v1751_v51 = vmax.f32 %v1676_v47, 0.0 }
 0x39d   : > { %v1515_v52 = vpop.f32.mrf.mxu0 }
 0x39e   : > { %v1516_v53 = vadd.f32 %v3188_v48, %v1515_v52  ;;  %v1781_v54 = vpack.c.bf16 %v1751_v51, %v1750_v49 }
 0x3a0   : > { %v1564_v56 = vmax.f32 %v1516_v53, 0.0  ;;  %1877 = vmatmul.bf16.gmra.mxu2 %v1781_v54 }
 0x3a1   : > { %v1678_v10 = vpop.f32.mrf.mxu1 }
 0x3a2   : > { %v1585_v44 = vpack.c.bf16 %v1564_v56, %v1563_v55  ;;  %v1679_v59 = vadd.f32 %v3246_v28, %v1678_v10  ;;  %v2592_v55 = vld [vmem:[%s3466_s15] sm:$0xff] }
 0x3a3   : > { %2076 = vmatpush.bf16.msrb.mxu3 %v2592_v55 }
 0x3a4   : > { %1717 = vmatmul.bf16.gmra.mxu1 %v1585_v44  ;;  %v1752_v62 = vmax.f32 %v1679_v59, 0.0 }
 0x3a5   : > { %v1518_v58 = vpop.f32.mrf.mxu0 }
 0x3a6   : > { %v1519_v63 = vadd.f32 %v3188_v48, %v1518_v58 }
 0x3a8   : > { %v1565_v4 = vmax.f32 %v1519_v63, 0.0 }
 0x3a9   : > { %v1680_v60 = vpop.f32.mrf.mxu1 }
 0x3aa   : > { %v1681_v61 = vadd.f32 %v3246_v28, %v1680_v60 }
 0x3ac   : > { %v1753_v0 = vmax.f32 %v1681_v61, 0.0 }
 0x3ad   : > { %v1520_v1 = vpop.f32.mrf.mxu0 }
 0x3ae   : > { %v1521_v2 = vadd.f32 %v3188_v48, %v1520_v1  ;;  %v1782_v3 = vpack.c.bf16 %v1753_v0, %v1752_v62 }
 0x3b0   : > { %v1566_v5 = vmax.f32 %v1521_v2, 0.0  ;;  %1882 = vmatmul.bf16.gmra.mxu2 %v1782_v3 }
 0x3b1   : > { %v1683_v6 = vpop.f32.mrf.mxu1 }
 0x3b2   : > { %v1586_v7 = vpack.c.bf16 %v1566_v5, %v1565_v4  ;;  %v1684_v11 = vadd.f32 %v3246_v28, %v1683_v6 }
 0x3b4   : > { %1722 = vmatmul.bf16.gmra.mxu1 %v1586_v7  ;;  %v1754_v15 = vmax.f32 %v1684_v11, 0.0 }
 0x3b5   : > { %v1523_v9 = vpop.f32.mrf.mxu0 }
 0x3b6   : > { %v1524_v16 = vadd.f32 %v3188_v48, %v1523_v9 }
 0x3b8   : > { %v1567_v21 = vmax.f32 %v1524_v16, 0.0 }
 0x3b9   : > { %v1685_v13 = vpop.f32.mrf.mxu1 }
 0x3ba   : > { %v1686_v14 = vadd.f32 %v3246_v28, %v1685_v13 }
 0x3bc   : > { %v1755_v17 = vmax.f32 %v1686_v14, 0.0 }
 0x3bd   : > { %v1525_v18 = vpop.f32.mrf.mxu0 }
 0x3be   : > { %v1526_v19 = vadd.f32 %v3188_v48, %v1525_v18  ;;  %v1783_v20 = vpack.c.bf16 %v1755_v17, %v1754_v15 }
 0x3c0   : > { %v1568_v8 = vmax.f32 %v1526_v19, 0.0  ;;  %1887 = vmatmul.bf16.gmra.mxu2 %v1783_v20 }
 0x3c1   : > { %v1688_v22 = vpop.f32.mrf.mxu1 }
 0x3c2   : > { %v1587_v23 = vpack.c.bf16 %v1568_v8, %v1567_v21  ;;  %v1689_v26 = vadd.f32 %v3246_v28, %v1688_v22  ;;  %v3295_v21 = vld [vmem:[%s3465_s14] ss:$0 sm:$0xff] }
 0x3c4   : > { %1727 = vmatmul.bf16.gmra.mxu1 %v1587_v23  ;;  %v1756_v30 = vmax.f32 %v1689_v26, 0.0 }
 0x3c5   : > { %v1528_v25 = vpop.f32.mrf.mxu0 }
 0x3c6   : > { %v1529_v31 = vadd.f32 %v3188_v48, %v1528_v25 }
 0x3c8   : > { %v1569_v36 = vmax.f32 %v1529_v31, 0.0 }
 0x3c9   : > { %v1690_v27 = vpop.f32.mrf.mxu1 }
 0x3ca   : > { %v1691_v29 = vadd.f32 %v3246_v28, %v1690_v27 }
 0x3cc   : > { %v1757_v32 = vmax.f32 %v1691_v29, 0.0 }
 0x3cd   : > { %v1530_v33 = vpop.f32.mrf.mxu0 }
 0x3ce   : > { %v1784_v34 = vpack.c.bf16 %v1757_v32, %v1756_v30  ;;  %v1531_v35 = vadd.f32 %v3188_v48, %v1530_v33 }
 0x3d0   : > { %v1570_v37 = vmax.f32 %v1531_v35, 0.0  ;;  %1892 = vmatmul.bf16.gmra.mxu2 %v1784_v34 }
 0x3d1   : > { %v1693_v38 = vpop.f32.mrf.mxu1 }
 0x3d2   : > { %v1588_v39 = vpack.c.bf16 %v1570_v37, %v1569_v36  ;;  %v1694_v12 = vadd.f32 %v3246_v28, %v1693_v38 }
 0x3d4   : > { %1732 = vmatmul.bf16.gmra.mxu1 %v1588_v39  ;;  %v1758_v43 = vmax.f32 %v1694_v12, 0.0 }
 0x3d5   : > { %v1533_v40 = vpop.f32.mrf.mxu0 }
 0x3d6   : > { %v1534_v45 = vadd.f32 %v3188_v48, %v1533_v40 }
 0x3d8   : > { %v1571_v51 = vmax.f32 %v1534_v45, 0.0 }
 0x3d9   : > { %v1695_v41 = vpop.f32.mrf.mxu1 }
 0x3da   : > { %v1696_v42 = vadd.f32 %v3246_v28, %v1695_v41 }
 0x3dc   : > { %v1759_v46 = vmax.f32 %v1696_v42, 0.0 }
 0x3dd   : > { %v1535_v47 = vpop.f32.mrf.mxu0 }
 0x3de   : > { %v1785_v49 = vpack.c.bf16 %v1759_v46, %v1758_v43  ;;  %v1536_v50 = vadd.f32 %v3188_v48, %v1535_v47 }
 0x3e0   : > { %v1572_v52 = vmax.f32 %v1536_v50, 0.0  ;;  %1897 = vmatmul.bf16.gmra.mxu2 %v1785_v49 }
 0x3e1   : > { %v1698_v53 = vpop.f32.mrf.mxu1 }
 0x3e2   : > { %v1589_v54 = vpack.c.bf16 %v1572_v52, %v1571_v51  ;;  %v1699_v10 = vadd.f32 %v3246_v28, %v1698_v53 }
 0x3e4   : > { %1737 = vmatmul.bf16.gmra.mxu1 %v1589_v54  ;;  %v1760_v58 = vmax.f32 %v1699_v10, 0.0 }
 0x3e5   : > { %v1538_v56 = vpop.f32.mrf.mxu0 }
 0x3e6   : > { %v1539_v59 = vadd.f32 %v3188_v48, %v1538_v56 }
 0x3e8   : > { %v1573_v0 = vmax.f32 %v1539_v59, 0.0 }
 0x3e9   : > { %v1700_v44 = vpop.f32.mrf.mxu1 }
 0x3ea   : > { %v1701_v57 = vadd.f32 %v3246_v28, %v1700_v44 }
 0x3ec   : > { %v1761_v60 = vmax.f32 %v1701_v57, 0.0 }
 0x3ed   : > { %v1540_v61 = vpop.f32.mrf.mxu0 }
 0x3ee   : > { %v1786_v62 = vpack.c.bf16 %v1761_v60, %v1760_v58  ;;  %v1541_v63 = vadd.f32 %v3188_v48, %v1540_v61 }
 0x3f0   : > { %v1574_v1 = vmax.f32 %v1541_v63, 0.0  ;;  %1902 = vmatmul.bf16.gmra.mxu2 %v1786_v62 }
 0x3f1   : > { %v1703_v2 = vpop.f32.mrf.mxu1 }
 0x3f2   : > { %v1590_v3 = vpack.c.bf16 %v1574_v1, %v1573_v0  ;;  %v1704_v4 = vadd.f32 %v3246_v28, %v1703_v2 }
 0x3f4   : > { %1742 = vmatmul.bf16.gmra.mxu1 %v1590_v3  ;;  %v1762_v7 = vmax.f32 %v1704_v4, 0.0 }
 0x3f9   : > { %v1705_v5 = vpop.f32.mrf.mxu1 }
 0x3fa   : > { %v1706_v6 = vadd.f32 %v3246_v28, %v1705_v5 }
 0x3fc   : > { %v1763_v9 = vmax.f32 %v1706_v6, 0.0 }
 0x3fe   : > { %v1787_v11 = vpack.c.bf16 %v1763_v9, %v1762_v7 }
 0x400   : > { %1907 = vmatmul.bf16.gmra.mxu2 %v1787_v11 }
 0x401   : > { %v1708_v13 = vpop.f32.mrf.mxu1 }
 0x402   : > { %v1709_v14 = vadd.f32 %v3246_v28, %v1708_v13 }
 0x404   : > { %v1764_v16 = vmax.f32 %v1709_v14, 0.0 }
 0x409   : > { %v1710_v15 = vpop.f32.mrf.mxu1 }
 0x40a   : > { %v1711_v48 = vadd.f32 %v3246_v28, %v1710_v15 }
 0x40c   : > { %v1765_v17 = vmax.f32 %v1711_v48, 0.0 }
 0x40e   : > { %v1788_v18 = vpack.c.bf16 %v1765_v17, %v1764_v16 }
 0x410   : > { %1912 = vmatmul.bf16.gmra.mxu2 %v1788_v18 }
 0x411   : > { %v1713_v19 = vpop.f32.mrf.mxu1 }
 0x412   : > { %v1714_v8 = vadd.f32 %v3246_v28, %v1713_v19 }
 0x413   : > { %v1873_v20 = vpop.f32.mrf.mxu2 }
 0x414   : > { %v1874_v23 = vadd.f32 %v3295_v21, %v1873_v20  ;;  %v1766_v26 = vmax.f32 %v1714_v8, 0.0 }
 0x416   : > { %v1953_v30 = vmax.f32 %v1874_v23, 0.0 }
 0x419   : > { %v1715_v22 = vpop.f32.mrf.mxu1 }
 0x41a   : > { %v1716_v24 = vadd.f32 %v3246_v28, %v1715_v22 }
 0x41b   : > { %v1875_v25 = vpop.f32.mrf.mxu2 }
 0x41c   : > { %v1767_v27 = vmax.f32 %v1716_v24, 0.0  ;;  %v1876_v29 = vadd.f32 %v3295_v21, %v1875_v25 }
 0x41e   : > { %v1789_v31 = vpack.c.bf16 %v1767_v27, %v1766_v26  ;;  %v1954_v32 = vmax.f32 %v1876_v29, 0.0 }
 0x420   : > { %v1985_v33 = vpack.c.bf16 %v1954_v32, %v1953_v30  ;;  %1917 = vmatmul.bf16.gmra.mxu2 %v1789_v31 }
 0x421   : > { %v1718_v34 = vpop.f32.mrf.mxu1 }
 0x422   : > { %2077 = vmatmul.bf16.vlgmr.msrb.gmra.mxu3 %v1985_v33  ;;  %v1719_v36 = vadd.f32 %v3246_v28, %v1718_v34 }
 0x423   : > { %v1878_v35 = vpop.f32.mrf.mxu2 }
 0x424   : > { %v1879_v38 = vadd.f32 %v3295_v21, %v1878_v35  ;;  %v1768_v12 = vmax.f32 %v1719_v36, 0.0 }
 0x426   : > { %v1955_v43 = vmax.f32 %v1879_v38, 0.0 }
 0x429   : > { %v1720_v37 = vpop.f32.mrf.mxu1 }
 0x42a   : > { %v1721_v39 = vadd.f32 %v3246_v28, %v1720_v37 }
 0x42b   : > { %v1880_v40 = vpop.f32.mrf.mxu2 }
 0x42c   : > { %v1769_v41 = vmax.f32 %v1721_v39, 0.0  ;;  %v1881_v42 = vadd.f32 %v3295_v21, %v1880_v40 }
 0x42e   : > { %v1790_v45 = vpack.c.bf16 %v1769_v41, %v1768_v12  ;;  %v1956_v46 = vmax.f32 %v1881_v42, 0.0 }
 0x430   : > { %1922 = vmatmul.bf16.gmra.mxu2 %v1790_v45  ;;  %v1986_v47 = vpack.c.bf16 %v1956_v46, %v1955_v43 }
 0x431   : > { %v1723_v49 = vpop.f32.mrf.mxu1 }
 0x432   : > { %2082 = vmatmul.bf16.gmra.mxu3 %v1986_v47  ;;  %v1724_v51 = vadd.f32 %v3246_v28, %v1723_v49 }
 0x433   : > { %v1883_v50 = vpop.f32.mrf.mxu2 }
 0x434   : > { %v1884_v53 = vadd.f32 %v3295_v21, %v1883_v50  ;;  %v1770_v56 = vmax.f32 %v1724_v51, 0.0 }
 0x436   : > { %v1957_v57 = vmax.f32 %v1884_v53, 0.0 }
 0x439   : > { %v1725_v52 = vpop.f32.mrf.mxu1 }
 0x43a   : > { %v1726_v54 = vadd.f32 %v3246_v28, %v1725_v52 }
 0x43b   : > { %v1885_v55 = vpop.f32.mrf.mxu2 }
 0x43c   : > { %v1771_v10 = vmax.f32 %v1726_v54, 0.0  ;;  %v1886_v44 = vadd.f32 %v3295_v21, %v1885_v55 }
 0x43e   : > { %v1791_v58 = vpack.c.bf16 %v1771_v10, %v1770_v56  ;;  %v1958_v59 = vmax.f32 %v1886_v44, 0.0 }
 0x440   : > { %1927 = vmatmul.bf16.gmra.mxu2 %v1791_v58  ;;  %v1987_v60 = vpack.c.bf16 %v1958_v59, %v1957_v57 }
 0x441   : > { %v1728_v61 = vpop.f32.mrf.mxu1 }
 0x442   : > { %2087 = vmatmul.bf16.gmra.mxu3 %v1987_v60  ;;  %v1729_v63 = vadd.f32 %v3246_v28, %v1728_v61 }
 0x443   : > { %v1888_v62 = vpop.f32.mrf.mxu2 }
 0x444   : > { %v1889_v1 = vadd.f32 %v3295_v21, %v1888_v62  ;;  %v1772_v4 = vmax.f32 %v1729_v63, 0.0 }
 0x446   : > { %v1959_v7 = vmax.f32 %v1889_v1, 0.0 }
 0x449   : > { %v1730_v0 = vpop.f32.mrf.mxu1 }
 0x44a   : > { %v1731_v2 = vadd.f32 %v3246_v28, %v1730_v0 }
 0x44b   : > { %v1890_v3 = vpop.f32.mrf.mxu2 }
 0x44c   : > { %v1773_v5 = vmax.f32 %v1731_v2, 0.0  ;;  %v1891_v6 = vadd.f32 %v3295_v21, %v1890_v3 }
 0x44e   : > { %v1792_v9 = vpack.c.bf16 %v1773_v5, %v1772_v4  ;;  %v1960_v11 = vmax.f32 %v1891_v6, 0.0  ;;  %v3335_v4 = vld [vmem:[%s3467_s16] ss:$0 sm:$0xff] }
 0x450   : > { %1932 = vmatmul.bf16.gmra.mxu2 %v1792_v9  ;;  %v1988_v13 = vpack.c.bf16 %v1960_v11, %v1959_v7 }
 0x451   : > { %v1733_v14 = vpop.f32.mrf.mxu1 }
 0x452   : > { %2092 = vmatmul.bf16.gmra.mxu3 %v1988_v13  ;;  %v1734_v48 = vadd.f32 %v3246_v28, %v1733_v14 }
 0x453   : > { %v1893_v15 = vpop.f32.mrf.mxu2 }
 0x454   : > { %v1894_v17 = vadd.f32 %v3295_v21, %v1893_v15  ;;  %v1774_v20 = vmax.f32 %v1734_v48, 0.0 }
 0x456   : > { %v1961_v23 = vmax.f32 %v1894_v17, 0.0 }
 0x459   : > { %v1735_v16 = vpop.f32.mrf.mxu1 }
 0x45a   : > { %v1736_v18 = vadd.f32 %v3246_v28, %v1735_v16 }
 0x45b   : > { %v1895_v19 = vpop.f32.mrf.mxu2 }
 0x45c   : > { %v1775_v8 = vmax.f32 %v1736_v18, 0.0  ;;  %v1896_v22 = vadd.f32 %v3295_v21, %v1895_v19 }
 0x45e   : > { %v1793_v24 = vpack.c.bf16 %v1775_v8, %v1774_v20  ;;  %v1962_v25 = vmax.f32 %v1896_v22, 0.0 }
 0x460   : > { %v1989_v26 = vpack.c.bf16 %v1962_v25, %v1961_v23  ;;  %1937 = vmatmul.bf16.gmra.mxu2 %v1793_v24 }
 0x461   : > { %v1738_v27 = vpop.f32.mrf.mxu1 }
 0x462   : > { %2097 = vmatmul.bf16.gmra.mxu3 %v1989_v26  ;;  %v1739_v30 = vadd.f32 %v3246_v28, %v1738_v27 }
 0x463   : > { %v1898_v29 = vpop.f32.mrf.mxu2 }
 0x464   : > { %v1899_v32 = vadd.f32 %v3295_v21, %v1898_v29  ;;  %v1776_v35 = vmax.f32 %v1739_v30, 0.0 }
 0x466   : > { %v1963_v38 = vmax.f32 %v1899_v32, 0.0 }
 0x469   : > { %v1740_v31 = vpop.f32.mrf.mxu1 }
 0x46a   : > { %v1741_v33 = vadd.f32 %v3246_v28, %v1740_v31 }
 0x46b   : > { %v1900_v34 = vpop.f32.mrf.mxu2 }
 0x46c   : > { %v1777_v36 = vmax.f32 %v1741_v33, 0.0  ;;  %v1901_v37 = vadd.f32 %v3295_v21, %v1900_v34 }
 0x46e   : > { %v1794_v39 = vpack.c.bf16 %v1777_v36, %v1776_v35  ;;  %v1964_v40 = vmax.f32 %v1901_v37, 0.0 }
 0x470   : > { %v1990_v12 = vpack.c.bf16 %v1964_v40, %v1963_v38  ;;  %1942 = vmatmul.bf16.gmra.mxu2 %v1794_v39 }
 0x471   : > { %v1743_v41 = vpop.f32.mrf.mxu1 }
 0x472   : > { %2102 = vmatmul.bf16.gmra.mxu3 %v1990_v12  ;;  %v1744_v43 = vadd.f32 %v3246_v28, %v1743_v41 }
 0x473   : > { %v1903_v42 = vpop.f32.mrf.mxu2 }
 0x474   : > { %v1904_v46 = vadd.f32 %v3295_v21, %v1903_v42  ;;  %v1778_v50 = vmax.f32 %v1744_v43, 0.0 }
 0x476   : > { %v1965_v53 = vmax.f32 %v1904_v46, 0.0 }
 0x479   : > { %v1745_v45 = vpop.f32.mrf.mxu1 }
 0x47a   : > { %v1746_v47 = vadd.f32 %v3246_v28, %v1745_v45 }
 0x47b   : > { %v1905_v49 = vpop.f32.mrf.mxu2 }
 0x47c   : > { %v1779_v51 = vmax.f32 %v1746_v47, 0.0  ;;  %v1906_v52 = vadd.f32 %v3295_v21, %v1905_v49 }
 0x47e   : > { %v1795_v54 = vpack.c.bf16 %v1779_v51, %v1778_v50  ;;  %v1966_v55 = vmax.f32 %v1906_v52, 0.0 }
 0x480   : > { %v1991_v56 = vpack.c.bf16 %v1966_v55, %v1965_v53  ;;  %1947 = vmatmul.bf16.gmra.mxu2 %v1795_v54 }
 0x482   : > { %2107 = vmatmul.bf16.gmra.mxu3 %v1991_v56 }
 0x483   : > { %v1908_v10 = vpop.f32.mrf.mxu2 }
 0x484   : > { %v1909_v44 = vadd.f32 %v3295_v21, %v1908_v10 }
 0x486   : > { %v1967_v28 = vmax.f32 %v1909_v44, 0.0 }
 0x48b   : > { %v1910_v57 = vpop.f32.mrf.mxu2 }
 0x48c   : > { %v1911_v58 = vadd.f32 %v3295_v21, %v1910_v57 }
 0x48e   : > { %v1968_v59 = vmax.f32 %v1911_v58, 0.0 }
 0x490   : > { %v1992_v60 = vpack.c.bf16 %v1968_v59, %v1967_v28 }
 0x492   : > { %2112 = vmatmul.bf16.gmra.mxu3 %v1992_v60 }
 0x493   : > { %v1913_v61 = vpop.f32.mrf.mxu2 }
 0x494   : > { %v1914_v62 = vadd.f32 %v3295_v21, %v1913_v61 }
 0x496   : > { %v1969_v1 = vmax.f32 %v1914_v62, 0.0 }
 0x49b   : > { %v1915_v63 = vpop.f32.mrf.mxu2 }
 0x49c   : > { %v1916_v0 = vadd.f32 %v3295_v21, %v1915_v63 }
 0x49e   : > { %v1970_v2 = vmax.f32 %v1916_v0, 0.0 }
 0x4a0   : > { %v1993_v3 = vpack.c.bf16 %v1970_v2, %v1969_v1 }
 0x4a2   : > { %2117 = vmatmul.bf16.gmra.mxu3 %v1993_v3 }
 0x4a3   : > { %v1918_v5 = vpop.f32.mrf.mxu2 }
 0x4a4   : > { %v1919_v9 = vadd.f32 %v3295_v21, %v1918_v5 }
 0x4a5   : > { %v2078_v6 = vpop.f32.mrf.mxu3 }
 0x4a6   : > { %v2079_v7 = vadd.f32 %v3335_v4, %v2078_v6  ;;  %v1971_v15 = vmax.f32 %v1919_v9, 0.0 }
 0x4a8   : > { %2158 = vst [vmem:[%s3338_s17] sm:$0xff] %v2079_v7 }
 0x4ab   : > { %v1920_v11 = vpop.f32.mrf.mxu2 }
 0x4ac   : > { %v1921_v13 = vadd.f32 %v3295_v21, %v1920_v11 }
 0x4ad   : > { %v2080_v14 = vpop.f32.mrf.mxu3 }
 0x4ae   : > { %v1972_v48 = vmax.f32 %v1921_v13, 0.0  ;;  %v2081_v16 = vadd.f32 %v3335_v4, %v2080_v14 }
 0x4b0   : > { %v1994_v17 = vpack.c.bf16 %v1972_v48, %v1971_v15  ;;  %2159 = vst [vmem:[%s3338_s17 + $0x8] sm:$0xff] %v2081_v16 }
 0x4b2   : > { %2122 = vmatmul.bf16.gmra.mxu3 %v1994_v17 }
 0x4b3   : > { %v1923_v18 = vpop.f32.mrf.mxu2 }
 0x4b4   : > { %v1924_v8 = vadd.f32 %v3295_v21, %v1923_v18 }
 0x4b5   : > { %v2083_v19 = vpop.f32.mrf.mxu3 }
 0x4b6   : > { %v2084_v20 = vadd.f32 %v3335_v4, %v2083_v19  ;;  %v1973_v25 = vmax.f32 %v1924_v8, 0.0 }
 0x4b8   : > { %2160 = vst [vmem:[%s3338_s17 + $0x10] sm:$0xff] %v2084_v20 }
 0x4bb   : > { %v1925_v22 = vpop.f32.mrf.mxu2 }
 0x4bc   : > { %v1926_v23 = vadd.f32 %v3295_v21, %v1925_v22 }
 0x4bd   : > { %v2085_v24 = vpop.f32.mrf.mxu3 }
 0x4be   : > { %v1974_v26 = vmax.f32 %v1926_v23, 0.0  ;;  %v2086_v27 = vadd.f32 %v3335_v4, %v2085_v24 }
 0x4c0   : > { %v1995_v29 = vpack.c.bf16 %v1974_v26, %v1973_v25  ;;  %2161 = vst [vmem:[%s3338_s17 + $0x18] sm:$0xff] %v2086_v27 }
 0x4c2   : > { %2127 = vmatmul.bf16.gmra.mxu3 %v1995_v29 }
 0x4c3   : > { %v1928_v30 = vpop.f32.mrf.mxu2 }
 0x4c4   : > { %v1929_v33 = vadd.f32 %v3295_v21, %v1928_v30 }
 0x4c5   : > { %v2088_v31 = vpop.f32.mrf.mxu3 }
 0x4c6   : > { %v2089_v32 = vadd.f32 %v3335_v4, %v2088_v31  ;;  %v1975_v37 = vmax.f32 %v1929_v33, 0.0 }
 0x4c8   : > { %2162 = vst [vmem:[%s3338_s17 + $0x20] sm:$0xff] %v2089_v32 }
 0x4cb   : > { %v1930_v34 = vpop.f32.mrf.mxu2 }
 0x4cc   : > { %v1931_v35 = vadd.f32 %v3295_v21, %v1930_v34 }
 0x4cd   : > { %v2090_v36 = vpop.f32.mrf.mxu3 }
 0x4ce   : > { %v1976_v38 = vmax.f32 %v1931_v35, 0.0  ;;  %v2091_v39 = vadd.f32 %v3335_v4, %v2090_v36 }
 0x4d0   : > { %v1996_v40 = vpack.c.bf16 %v1976_v38, %v1975_v37  ;;  %2163 = vst [vmem:[%s3338_s17 + $0x28] sm:$0xff] %v2091_v39 }
 0x4d2   : > { %2132 = vmatmul.bf16.gmra.mxu3 %v1996_v40 }
 0x4d3   : > { %v1933_v12 = vpop.f32.mrf.mxu2 }
 0x4d4   : > { %v1934_v43 = vadd.f32 %v3295_v21, %v1933_v12 }
 0x4d5   : > { %v2093_v41 = vpop.f32.mrf.mxu3 }
 0x4d6   : > { %v2094_v42 = vadd.f32 %v3335_v4, %v2093_v41  ;;  %v1977_v49 = vmax.f32 %v1934_v43, 0.0 }
 0x4d8   : > { %2164 = vst [vmem:[%s3338_s17 + $0x30] sm:$0xff] %v2094_v42 }
 0x4db   : > { %v1935_v45 = vpop.f32.mrf.mxu2 }
 0x4dc   : > { %v1936_v46 = vadd.f32 %v3295_v21, %v1935_v45 }
 0x4dd   : > { %v2095_v47 = vpop.f32.mrf.mxu3 }
 0x4de   : > { %v1978_v50 = vmax.f32 %v1936_v46, 0.0  ;;  %v2096_v51 = vadd.f32 %v3335_v4, %v2095_v47 }
 0x4e0   : > { %v1997_v52 = vpack.c.bf16 %v1978_v50, %v1977_v49  ;;  %2165 = vst [vmem:[%s3338_s17 + $0x38] sm:$0xff] %v2096_v51 }
 0x4e2   : > { %2137 = vmatmul.bf16.gmra.mxu3 %v1997_v52 }
 0x4e3   : > { %v1938_v53 = vpop.f32.mrf.mxu2 }
 0x4e4   : > { %v1939_v56 = vadd.f32 %v3295_v21, %v1938_v53 }
 0x4e5   : > { %v2098_v54 = vpop.f32.mrf.mxu3 }
 0x4e6   : > { %v2099_v55 = vadd.f32 %v3335_v4, %v2098_v54  ;;  %v1979_v58 = vmax.f32 %v1939_v56, 0.0 }
 0x4e8   : > { %2166 = vst [vmem:[%s3338_s17 + $0x40] sm:$0xff] %v2099_v55 }
 0x4eb   : > { %v1940_v10 = vpop.f32.mrf.mxu2 }
 0x4ec   : > { %v1941_v44 = vadd.f32 %v3295_v21, %v1940_v10 }
 0x4ed   : > { %v2100_v57 = vpop.f32.mrf.mxu3 }
 0x4ee   : > { %v1980_v28 = vmax.f32 %v1941_v44, 0.0  ;;  %v2101_v59 = vadd.f32 %v3335_v4, %v2100_v57 }
 0x4f0   : > { %v1998_v60 = vpack.c.bf16 %v1980_v28, %v1979_v58  ;;  %2167 = vst [vmem:[%s3338_s17 + $0x48] sm:$0xff] %v2101_v59 }
 0x4f2   : > { %2142 = vmatmul.bf16.gmra.mxu3 %v1998_v60 }
 0x4f3   : > { %v1943_v61 = vpop.f32.mrf.mxu2 }
 0x4f4   : > { %v1944_v0 = vadd.f32 %v3295_v21, %v1943_v61 }
 0x4f5   : > { %v2103_v62 = vpop.f32.mrf.mxu3 }
 0x4f6   : > { %v2104_v63 = vadd.f32 %v3335_v4, %v2103_v62  ;;  %v1981_v5 = vmax.f32 %v1944_v0, 0.0 }
 0x4f8   : > { %2168 = vst [vmem:[%s3338_s17 + $0x50] sm:$0xff] %v2104_v63 }
 0x4fb   : > { %v1945_v1 = vpop.f32.mrf.mxu2 }
 0x4fc   : > { %v1946_v2 = vadd.f32 %v3295_v21, %v1945_v1 }
 0x4fd   : > { %v2105_v3 = vpop.f32.mrf.mxu3 }
 0x4fe   : > { %v1982_v6 = vmax.f32 %v1946_v2, 0.0  ;;  %v2106_v7 = vadd.f32 %v3335_v4, %v2105_v3 }
 0x500   : > { %v1999_v9 = vpack.c.bf16 %v1982_v6, %v1981_v5  ;;  %2169 = vst [vmem:[%s3338_s17 + $0x58] sm:$0xff] %v2106_v7 }
 0x502   : > { %2147 = vmatmul.bf16.gmra.mxu3 %v1999_v9 }
 0x503   : > { %v1948_v11 = vpop.f32.mrf.mxu2 }
 0x504   : > { %v1949_v15 = vadd.f32 %v3295_v21, %v1948_v11 }
 0x505   : > { %v2108_v13 = vpop.f32.mrf.mxu3 }
 0x506   : > { %v2109_v14 = vadd.f32 %v3335_v4, %v2108_v13  ;;  %v1983_v18 = vmax.f32 %v1949_v15, 0.0 }
 0x508   : > { %2170 = vst [vmem:[%s3338_s17 + $0x60] sm:$0xff] %v2109_v14 }
 0x50b   : > { %v1950_v48 = vpop.f32.mrf.mxu2 }
 0x50c   : > { %v1951_v16 = vadd.f32 %v3295_v21, %v1950_v48 }
 0x50d   : > { %v2110_v17 = vpop.f32.mrf.mxu3 }
 0x50e   : > { %v1984_v19 = vmax.f32 %v1951_v16, 0.0  ;;  %v2111_v20 = vadd.f32 %v3335_v4, %v2110_v17 }
 0x510   : > { %v2000_v8 = vpack.c.bf16 %v1984_v19, %v1983_v18  ;;  %2171 = vst [vmem:[%s3338_s17 + $0x68] sm:$0xff] %v2111_v20 }
 0x512   : > { %2152 = vmatmul.bf16.gmra.mxu3 %v2000_v8 }
 0x515   : > { %v2113_v22 = vpop.f32.mrf.mxu3 }
 0x516   : > { %v2114_v23 = vadd.f32 %v3335_v4, %v2113_v22 }
 0x518   : > { %2172 = vst [vmem:[%s3338_s17 + $0x70] sm:$0xff] %v2114_v23 }
 0x51d   : > { %v2115_v24 = vpop.f32.mrf.mxu3 }
 0x51e   : > { %v2116_v25 = vadd.f32 %v3335_v4, %v2115_v24 }
 0x520   : > { %2173 = vst [vmem:[%s3338_s17 + $0x78] sm:$0xff] %v2116_v25 }
 0x525   : > { %v2118_v21 = vpop.f32.mrf.mxu3 }
 0x526   : > { %v2119_v26 = vadd.f32 %v3335_v4, %v2118_v21 }
 0x528   : > { %2174 = vst [vmem:[%s3338_s17 + $0x80] sm:$0xff] %v2119_v26 }
 0x52d   : > { %v2120_v27 = vpop.f32.mrf.mxu3 }
 0x52e   : > { %v2121_v29 = vadd.f32 %v3335_v4, %v2120_v27 }
 0x530   : > { %2175 = vst [vmem:[%s3338_s17 + $0x88] sm:$0xff] %v2121_v29 }
 0x535   : > { %v2123_v30 = vpop.f32.mrf.mxu3 }
 0x536   : > { %v2124_v31 = vadd.f32 %v3335_v4, %v2123_v30 }
 0x538   : > { %2176 = vst [vmem:[%s3338_s17 + $0x90] sm:$0xff] %v2124_v31 }
 0x53d   : > { %v2125_v32 = vpop.f32.mrf.mxu3 }
 0x53e   : > { %v2126_v33 = vadd.f32 %v3335_v4, %v2125_v32 }
 0x540   : > { %2177 = vst [vmem:[%s3338_s17 + $0x98] sm:$0xff] %v2126_v33 }
 0x545   : > { %v2128_v34 = vpop.f32.mrf.mxu3 }
 0x546   : > { %v2129_v35 = vadd.f32 %v3335_v4, %v2128_v34 }
 0x548   : > { %2178 = vst [vmem:[%s3338_s17 + $0xa0] sm:$0xff] %v2129_v35 }
 0x54d   : > { %v2130_v36 = vpop.f32.mrf.mxu3 }
 0x54e   : > { %v2131_v37 = vadd.f32 %v3335_v4, %v2130_v36 }
 0x550   : > { %2179 = vst [vmem:[%s3338_s17 + $0xa8] sm:$0xff] %v2131_v37 }
 0x555   : > { %v2133_v38 = vpop.f32.mrf.mxu3 }
 0x556   : > { %v2134_v39 = vadd.f32 %v3335_v4, %v2133_v38 }
 0x558   : > { %2180 = vst [vmem:[%s3338_s17 + $0xb0] sm:$0xff] %v2134_v39 }
 0x55d   : > { %v2135_v40 = vpop.f32.mrf.mxu3 }
 0x55e   : > { %v2136_v12 = vadd.f32 %v3335_v4, %v2135_v40 }
 0x560   : > { %2181 = vst [vmem:[%s3338_s17 + $0xb8] sm:$0xff] %v2136_v12 }
 0x565   : > { %v2138_v41 = vpop.f32.mrf.mxu3 }
 0x566   : > { %v2139_v42 = vadd.f32 %v3335_v4, %v2138_v41 }
 0x568   : > { %2182 = vst [vmem:[%s3338_s17 + $0xc0] sm:$0xff] %v2139_v42 }
 0x56d   : > { %v2140_v43 = vpop.f32.mrf.mxu3 }
 0x56e   : > { %v2141_v45 = vadd.f32 %v3335_v4, %v2140_v43 }
 0x570   : > { %2183 = vst [vmem:[%s3338_s17 + $0xc8] sm:$0xff] %v2141_v45 }
 0x575   : > { %v2143_v46 = vpop.f32.mrf.mxu3 }
 0x576   : > { %v2144_v47 = vadd.f32 %v3335_v4, %v2143_v46 }
 0x578   : > { %2184 = vst [vmem:[%s3338_s17 + $0xd0] sm:$0xff] %v2144_v47 }
 0x57d   : > { %v2145_v49 = vpop.f32.mrf.mxu3 }
 0x57e   : > { %v2146_v50 = vadd.f32 %v3335_v4, %v2145_v49 }
 0x580   : > { %2185 = vst [vmem:[%s3338_s17 + $0xd8] sm:$0xff] %v2146_v50 }
 0x585   : > { %v2148_v51 = vpop.f32.mrf.mxu3 }
 0x586   : > { %v2149_v52 = vadd.f32 %v3335_v4, %v2148_v51 }
 0x588   : > { %2186 = vst [vmem:[%s3338_s17 + $0xe0] sm:$0xff] %v2149_v52 }
 0x58d   : > { %v2150_v53 = vpop.f32.mrf.mxu3 }
 0x58e   : > { %v2151_v54 = vadd.f32 %v3335_v4, %v2150_v53 }
 0x590   : > { %2187 = vst [vmem:[%s3338_s17 + $0xe8] sm:$0xff] %v2151_v54 }
 0x595   : > { %v2153_v55 = vpop.f32.mrf.mxu3 }
 0x596   : > { %v2154_v56 = vadd.f32 %v3335_v4, %v2153_v55 }
 0x598   : > { %2188 = vst [vmem:[%s3338_s17 + $0xf0] sm:$0xff] %v2154_v56 }
 0x59d   : > { %v2155_v10 = vpop.f32.mrf.mxu3 }
 0x59e   : > { %v2156_v44 = vadd.f32 %v3335_v4, %v2155_v10 }
 0x5a0   : > { %2189 = vst [vmem:[%s3338_s17 + $0xf8] sm:$0xff] %v2156_v44 }
 0x5a1   : > { %2677 = shalt.err (!%p2674_p3)
}
 0x5a2   : > { %s2714_s20 = smov 128   ;;  %s2715_s17 = smov 8  }
 0x5a3   : > { %2601 = dma.vmem_to_hbm [thread:$0]  (%p2844_p5), %s2204_s18, 4096, %s2206_s0, %s2191_s21, %s2714_s20, %s2714_s20, %s2715_s17  }
 0x5a4 PF: > { %s3497_s2 = sld [smem:[#allocation7_spill]] }
 0x5a5   : > { %s3498_s3 = sld [smem:[#allocation5_spill]] }
 0x5aa   : > { %p2607_p4 = scmp.ge.s32.totalorder %s3497_s2, 2 }
 0x5ab   : > { %s2220_s24 = sand.u32 1, %s3498_s3  }
 0x5ac   : > { %p2604_p7 = pnand %p2607_p4, %p2848_p6  ;;  %s2221_s27 = scalar_lea.sflag [#allocation3], %s2220_s24 }
 0x5ae   : > { %p2605_p8 = pneg %p2604_p7 }
 0x5b0   : > { %2695 = dma.done.wait (%p2605_p8), %s2221_s27, 4096  }
 0x5b1   : > { %2697 = vsyncadd (%p2605_p8), %s2221_s27, 4294963200  ;;  %s3500_s27 = sld [smem:[#allocation8_spill]]  ;;  %s3503_s24 = smov %s2704_s25 }
 0x5b2   : > { %s3501_s28 = sld [smem:[#allocation6_spill]] }
 0x5b3   : > { %s3502_s26 = sld [smem:[#allocation9_spill]] }
 0x5b7   : > { %p27_p9 = scmp.ge.s32.totalorder %s3500_s27, 4  }
 0x5b8   : > { %s3504_s25 = smov %s3501_s28 }
 0x5b9   :  { %29 = sbr.rel (!%p27_p9) target bundleno = 10 (0xa), region = 123 }
 0x5be   :  { %2227 = vsyncpa [#allocation3], 1 }
 0x5bf   :  { %2229 = vsyncpa [#allocation3 + $0x1], 1 }

</bundles_post_ra>
